<compile_context>
chip_gen: v7x
topology: tpu7x:2x2x1
jax: 0.10.0
libtpu: 0.0.40
codegen_flags: <defaults>
</compile_context>

<pallas_src>
import functools

import jax
import jax.numpy as jnp
from jax.experimental import pallas as pl
from jax.experimental.pallas import tpu as pltpu

_LANES = 128        # pad GEMM output channels to a full vreg lane width
_MAX_TM = 256       # row tile for the GEMM grid


def _round_up(x, m):
    return (x + m - 1) // m * m


# ----------------------------- Pallas kernels ------------------------------

def _gemm_bias_kernel(a_ref, w_ref, b_ref, o_ref, *, relu, relu_cols):
    # a: (TM, K) bf16, w: (K, CP) bf16, b: (1, CP) f32 -> o: (TM, CP) f32
    acc = jnp.dot(a_ref[...], w_ref[...], preferred_element_type=jnp.float32)
    y = acc + b_ref[...]
    if relu:
        y = jnp.maximum(y, 0.0)
    elif relu_cols is not None:
        # Mixed epilogue (fused conv + downsample): ReLU only on cols < relu_cols.
        col = jax.lax.broadcasted_iota(jnp.int32, y.shape, 1)
        y = jnp.where(col < relu_cols, jnp.maximum(y, 0.0), y)
    o_ref[...] = y.astype(o_ref.dtype)


def _gemm_bias_res_kernel(a_ref, w_ref, b_ref, r_ref, o_ref):
    # Second conv of a BasicBlock: BN(conv) + residual, then ReLU.
    acc = jnp.dot(a_ref[...], w_ref[...], preferred_element_type=jnp.float32)
    o_ref[...] = jnp.maximum(acc + b_ref[...] + r_ref[...], 0.0).astype(o_ref.dtype)


def _maxpool_w_kernel(x_ref, o_ref):
    # x: (R, Wp, C) padded with -inf; 3-tap max, stride 2 along W (sublane dim).
    wo = o_ref.shape[1]
    m = x_ref[:, pl.ds(0, wo, 2), :]
    m = jnp.maximum(m, x_ref[:, pl.ds(1, wo, 2), :])
    m = jnp.maximum(m, x_ref[:, pl.ds(2, wo, 2), :])
    o_ref[...] = m


def _maxpool_h_kernel(x_ref, o_ref):
    # x: (B, Hp, W*C); 3-tap max, stride 2 along H (sublane dim).
    ho = o_ref.shape[1]
    m = x_ref[:, pl.ds(0, ho, 2), :]
    m = jnp.maximum(m, x_ref[:, pl.ds(1, ho, 2), :])
    m = jnp.maximum(m, x_ref[:, pl.ds(2, ho, 2), :])
    o_ref[...] = m


def _global_avg_pool_kernel(x_ref, o_ref):
    # x: (B, H*W, C) -> mean over spatial axis -> (B, C)
    x = x_ref[...]
    o_ref[...] = (jnp.sum(x, axis=1) * (1.0 / x.shape[1])).astype(o_ref.dtype)


_VMEM_SPEC = pl.BlockSpec(memory_space=pltpu.MemorySpace.VMEM)


# ------------------------------ op wrappers ---------------------------------

def _gemm(patches, wmat, bias, *, relu=True, relu_cols=None, residual=None):
    """Gridded, row-tiled GEMM with fused bias/ReLU/residual epilogue.

    patches: (N, K) bf16, wmat: (K, Cout) f32 (BN scale already folded in),
    bias: (Cout,) f32, residual: (N, Cres) f32 or None.
    Returns (N, 128) f32 with real channels in cols [0:Cout)."""
    n, k = patches.shape
    cout = wmat.shape[1]
    kp = _round_up(k, 16)
    cp = _round_up(cout, _LANES)
    tm = _MAX_TM if n >= _MAX_TM else _round_up(n, 16)
    np_ = _round_up(n, tm)

    a = jnp.pad(patches, ((0, np_ - n), (0, kp - k))).astype(jnp.bfloat16)
    w = jnp.pad(wmat, ((0, kp - k), (0, cp - cout))).astype(jnp.bfloat16)
    b = jnp.pad(bias, (0, cp - cout)).reshape(1, cp).astype(jnp.float32)

    grid = (np_ // tm,)
    a_spec = pl.BlockSpec((tm, kp), lambda i: (i, 0))
    w_spec = pl.BlockSpec((kp, cp), lambda i: (0, 0))   # pinned across the grid
    b_spec = pl.BlockSpec((1, cp), lambda i: (0, 0))
    o_spec = pl.BlockSpec((tm, cp), lambda i: (i, 0))
    out_shape = jax.ShapeDtypeStruct((np_, cp), jnp.float32)
    cparams = pltpu.CompilerParams(
        dimension_semantics=("parallel",),
        vmem_limit_bytes=32 * 1024 * 1024,
    )

    if residual is None:
        kern = functools.partial(_gemm_bias_kernel, relu=relu, relu_cols=relu_cols)
        y = pl.pallas_call(
            kern, out_shape=out_shape, grid=grid,
            in_specs=[a_spec, w_spec, b_spec], out_specs=o_spec,
            compiler_params=cparams,
        )(a, w, b)
    else:
        cres = residual.shape[1]
        r = jnp.pad(residual, ((0, np_ - n), (0, cp - cres))).astype(jnp.float32)
        r_spec = pl.BlockSpec((tm, cp), lambda i: (i, 0))
        y = pl.pallas_call(
            _gemm_bias_res_kernel, out_shape=out_shape, grid=grid,
            in_specs=[a_spec, w_spec, b_spec, r_spec], out_specs=o_spec,
            compiler_params=cparams,
        )(a, w, b, r)
    return y[:n]


def _im2col(x, kh, kw, stride, pad):
    # x: (B, H, W, C) NHWC -> patches (B*Ho*Wo, kh*kw*C)
    # TODO(synk): replace JAX-side im2col with in-kernel implicit im2col
    # (halo-tiled input) to eliminate the kh*kw HBM expansion entirely.
    b, h, w, c = x.shape
    xp = jnp.pad(x, ((0, 0), (pad, pad), (pad, pad), (0, 0)))
    ho = (h + 2 * pad - kh) // stride + 1
    wo = (w + 2 * pad - kw) // stride + 1
    cols = []
    for i in range(kh):
        for j in range(kw):
            cols.append(xp[:, i:i + stride * (ho - 1) + 1:stride,
                            j:j + stride * (wo - 1) + 1:stride, :])
    p = jnp.stack(cols, axis=3)               # (B, Ho, Wo, kh*kw, C)
    return p.reshape(b * ho * wo, kh * kw * c), ho, wo


def _fold_bn(w, bn, eps=1e-5):
    """Fold eval-mode BN into the GEMM weight matrix + bias.
    w: PyTorch layout (Cout, Cin, kh, kw)."""
    # TODO(synk): PyTorch default is train-mode BN (batch statistics); we use
    # eval-mode running stats folded into scale/bias.
    cout, cin, kh, kw = w.shape
    inv_std = 1.0 / jnp.sqrt(bn['var'] + eps)
    scale = bn['gamma'] * inv_std                       # (cout,)
    bias = bn['beta'] - bn['mean'] * scale              # (cout,)
    wmat = jnp.transpose(w, (2, 3, 1, 0)).reshape(kh * kw * cin, cout)
    return wmat * scale[None, :], bias


def conv_gemm(x, wmat, bias, kh, kw, *, stride, pad, relu=True, relu_cols=None,
              residual=None):
    """conv (+ folded BN) via im2col + gridded Pallas GEMM.  x is NHWC f32.
    Returns (B, Ho, Wo, 128) f32, real channels in the leading columns."""
    b = x.shape[0]
    patches, ho, wo = _im2col(x.astype(jnp.bfloat16), kh, kw, stride, pad)
    res2d = None
    if residual is not None:
        res2d = residual.reshape(b * ho * wo, residual.shape[-1])
    y = _gemm(patches, wmat, bias, relu=relu, relu_cols=relu_cols, residual=res2d)
    return y.reshape(b, ho, wo, y.shape[-1])


def maxpool_3x3_s2_p1(x):
    """3x3 / stride-2 / pad-1 max pool as two Pallas passes (W then H),
    using strided pl.ds reads instead of a 9-tap HBM stack."""
    b, h, w, c = x.shape
    ho = (h + 2 - 3) // 2 + 1
    wo = (w + 2 - 3) // 2 + 1
    xp = jnp.pad(x, ((0, 0), (1, 1), (1, 1), (0, 0)), constant_values=-jnp.inf)
    hp, wp = h + 2, w + 2

    # pass 1: pool along W (strided sublane reads)
    x1 = xp.reshape(b * hp, wp, c)
    y1 = pl.pallas_call(
        _maxpool_w_kernel,
        out_shape=jax.ShapeDtypeStruct((b * hp, wo, c), x.dtype),
        in_specs=[_VMEM_SPEC], out_specs=_VMEM_SPEC,
    )(x1)

    # pass 2: pool along H (strided sublane reads, lanes = wo*c)
    x2 = y1.reshape(b, hp, wo * c)
    y2 = pl.pallas_call(
        _maxpool_h_kernel,
        out_shape=jax.ShapeDtypeStruct((b, ho, wo * c), x.dtype),
        in_specs=[_VMEM_SPEC], out_specs=_VMEM_SPEC,
    )(x2)
    return y2.reshape(b, ho, wo, c)


def global_avg_pool(x):
    b, h, w, c = x.shape
    xf = x.reshape(b, h * w, c)
    return pl.pallas_call(
        _global_avg_pool_kernel,
        out_shape=jax.ShapeDtypeStruct((b, c), x.dtype),
        in_specs=[_VMEM_SPEC], out_specs=_VMEM_SPEC,
    )(xf)


# ------------------------------ parameters ----------------------------------

def _conv_w(key, cout, cin, kh, kw):
    fan_in = cin * kh * kw
    return jax.random.normal(key, (cout, cin, kh, kw), jnp.float32) * \
        (2.0 / fan_in) ** 0.5


def _bn_p(key, c):
    k1, k2 = jax.random.split(key)
    return dict(gamma=1.0 + 0.1 * jax.random.normal(k1, (c,), jnp.float32),
                beta=0.1 * jax.random.normal(k2, (c,), jnp.float32),
                mean=jnp.zeros((c,), jnp.float32),
                var=jnp.ones((c,), jnp.float32))


def init_params(key):
    ks = jax.random.split(key, 12)
    return {
        'conv1_w': _conv_w(ks[0], 16, 3, 7, 7),   'bn1': _bn_p(ks[1], 16),
        'l1_conv1_w': _conv_w(ks[2], 16, 16, 3, 3), 'l1_bn1': _bn_p(ks[3], 16),
        'l1_conv2_w': _conv_w(ks[4], 16, 16, 3, 3), 'l1_bn2': _bn_p(ks[5], 16),
        'l2_conv1_w': _conv_w(ks[6], 32, 16, 3, 3), 'l2_bn1': _bn_p(ks[7], 32),
        'l2_conv2_w': _conv_w(ks[8], 32, 32, 3, 3), 'l2_bn2': _bn_p(ks[9], 32),
        'l2_down_w': _conv_w(ks[10], 32, 16, 1, 1), 'l2_down_bn': _bn_p(ks[11], 32),
    }


# ------------------------------ forward pass ---------------------------------

def visual_model_forward(params, x_nchw):
    """x_nchw: (BS, 3, H, W) float32 -> (BS, C_feat, 1, 1), matching
    nn.Sequential(children()[:-1]) of a resnet-style backbone."""
    p = params
    x = jnp.transpose(x_nchw, (0, 2, 3, 1))          # NCHW -> NHWC

    # stem: conv7x7/s2 + BN + ReLU, then maxpool3x3/s2
    w1, b1 = _fold_bn(p['conv1_w'], p['bn1'])
    x = conv_gemm(x, w1, b1, 7, 7, stride=2, pad=3)[..., :16]
    x = maxpool_3x3_s2_p1(x)

    # layer1: BasicBlock(16 -> 16), identity skip
    identity = x
    wA, bA = _fold_bn(p['l1_conv1_w'], p['l1_bn1'])
    y = conv_gemm(x, wA, bA, 3, 3, stride=1, pad=1)[..., :16]
    wB, bB = _fold_bn(p['l1_conv2_w'], p['l1_bn2'])
    x = conv_gemm(y, wB, bB, 3, 3, stride=1, pad=1, residual=identity)[..., :16]

    # layer2: BasicBlock(16 -> 32, stride 2) with 1x1/s2 downsample skip.
    # Fuse conv1 (ReLU) and the downsample (no ReLU) into ONE GEMM: the 1x1/s2
    # conv equals the center tap of the 3x3/s2 im2col, so its weights occupy
    # rows [4*Cin, 5*Cin) of extra output columns.
    w21, b21 = _fold_bn(p['l2_conv1_w'], p['l2_bn1'])       # (144, 32)
    wd, bd = _fold_bn(p['l2_down_w'], p['l2_down_bn'])      # (16, 32)
    cin = x.shape[-1]
    wd_full = jnp.zeros((w21.shape[0], wd.shape[1]), jnp.float32)
    wd_full = wd_full.at[4 * cin:5 * cin, :].set(wd)
    w_dual = jnp.concatenate([w21, wd_full], axis=1)        # (144, 64)
    b_dual = jnp.concatenate([b21, bd])                     # (64,)
    out_dual = conv_gemm(x, w_dual, b_dual, 3, 3, stride=2, pad=1,
                         relu=False, relu_cols=32)
    y2 = out_dual[..., :32]          # conv1 output (ReLU applied)
    ds = out_dual[..., 32:64]        # downsample skip (no ReLU)

    w22, b22 = _fold_bn(p['l2_conv2_w'], p['l2_bn2'])
    x = conv_gemm(y2, w22, b22, 3, 3, stride=1, pad=1, residual=ds)  # (B,4,4,128)

    feats = global_avg_pool(x)[:, :32]                      # (B, C_feat)
    return feats[:, :, None, None]                          # (B, C_feat, 1, 1)


if __name__ == "__main__":
    key = jax.random.PRNGKey(0)
    pkey, xkey = jax.random.split(key)
    params = init_params(pkey)
    x = jax.random.normal(xkey, (2, 3, 32, 32), jnp.float32)   # BS x 3 x H x W

    fwd = jax.jit(functools.partial(visual_model_forward, params))
    out = fwd(x)
    jax.block_until_ready(out)
    assert out.shape == (2, 32, 1, 1), out.shape
    assert out.dtype == jnp.float32
    print("KERNEL_OK")
</pallas_src>

<mosaic_0001>
module attributes {stable_mosaic.version = 11 : i64} {
  func.func @_gemm_bias_kernel(%arg0: i32, %arg1: memref<256x160xbf16, #tpu.memory_space<vmem>>, %arg2: memref<160x128xbf16, #tpu.memory_space<vmem>>, %arg3: memref<1x128xf32, #tpu.memory_space<vmem>>, %arg4: memref<256x128xf32, #tpu.memory_space<vmem>>) attributes {dimension_semantics = [#tpu.dimension_semantics<parallel>], iteration_bounds = array<i64: 2>, scalar_prefetch = 0 : i64, scratch_operands = 0 : i64, tpu.core_type = #tpu.core_type<tc>, window_params = [{transform_indices = @transform_0, window_bounds = array<i64: 256, 160>}, {pipeline_mode = #tpu.pipeline_mode<synchronous>, transform_indices = @transform_1, window_bounds = array<i64: 160, 128>}, {pipeline_mode = #tpu.pipeline_mode<synchronous>, transform_indices = @transform_2, window_bounds = array<i64: 1, 128>}, {transform_indices = @transform_3, window_bounds = array<i64: 256, 128>}]} {
    %c0 = arith.constant 0 : index
    %c0_0 = arith.constant 0 : index
    %0 = vector.load %arg1[%c0, %c0_0] : memref<256x160xbf16, #tpu.memory_space<vmem>>, vector<256x160xbf16>
    %c0_1 = arith.constant 0 : index
    %c0_2 = arith.constant 0 : index
    %1 = vector.load %arg2[%c0_1, %c0_2] : memref<160x128xbf16, #tpu.memory_space<vmem>>, vector<160x128xbf16>
    %cst = arith.constant dense<0.000000e+00> : vector<256x128xf32>
    %2 = tpu.matmul %0, %1, %cst {dimension_numbers = #tpu.dot_dimension_numbers<[1], [0], [0], [1], [0, 0, 1, 1], [], []>} : vector<256x160xbf16>, vector<160x128xbf16>, vector<256x128xf32> -> vector<256x128xf32>
    %c0_3 = arith.constant 0 : index
    %c0_4 = arith.constant 0 : index
    %3 = vector.load %arg3[%c0_3, %c0_4] : memref<1x128xf32, #tpu.memory_space<vmem>>, vector<1x128xf32>
    %4 = vector.broadcast %3 : vector<1x128xf32> to vector<256x128xf32>
    %5 = arith.addf %2, %4 : vector<256x128xf32>
    %cst_5 = arith.constant 0.000000e+00 : f32
    %6 = vector.broadcast %cst_5 : f32 to vector<256x128xf32>
    %7 = arith.maximumf %5, %6 : vector<256x128xf32>
    %c0_6 = arith.constant 0 : index
    %c0_7 = arith.constant 0 : index
    %8 = vector.load %arg4[%c0_6, %c0_7] : memref<256x128xf32, #tpu.memory_space<vmem>>, vector<256x128xf32>
    tpu.vector_store %arg4[%c0_6, %c0_7], %7 {strides = array<i32>} : memref<256x128xf32, #tpu.memory_space<vmem>>, vector<256x128xf32>,
    return
  }
  func.func @transform_0(%arg0: i32) -> (i32, i32) {
    %c0_i32 = arith.constant 0 : i32
    %c0_i32_0 = arith.constant 0 : i32
    return %arg0, %c0_i32 : i32, i32
  }
  func.func @transform_1(%arg0: i32) -> (i32, i32) {
    %c0_i32 = arith.constant 0 : i32
    %c0_i32_0 = arith.constant 0 : i32
    %c0_i32_1 = arith.constant 0 : i32
    return %c0_i32, %c0_i32_0 : i32, i32
  }
  func.func @transform_2(%arg0: i32) -> (i32, i32) {
    %c0_i32 = arith.constant 0 : i32
    %c0_i32_0 = arith.constant 0 : i32
    %c0_i32_1 = arith.constant 0 : i32
    return %c0_i32, %c0_i32_0 : i32, i32
  }
  func.func @transform_3(%arg0: i32) -> (i32, i32) {
    %c0_i32 = arith.constant 0 : i32
    %c0_i32_0 = arith.constant 0 : i32
    return %arg0, %c0_i32 : i32, i32
  }
}

module attributes {stable_mosaic.version = 11 : i64} {
  func.func @_maxpool_w_kernel(%arg0: memref<36x18x16xf32, #tpu.memory_space<vmem>>, %arg1: memref<36x8x16xf32, #tpu.memory_space<vmem>>) attributes {dimension_semantics = [], scalar_prefetch = 0 : i64, scratch_operands = 0 : i64, tpu.core_type = #tpu.core_type<tc>} {
    %c0 = arith.constant 0 : index
    %c0_0 = arith.constant 0 : index
    %c0_1 = arith.constant 0 : index
    %0 = tpu.strided_load %arg0[%c0, %c0_0, %c0_1] {strides = array<i32: 1, 2, 1>} : memref<36x18x16xf32, #tpu.memory_space<vmem>>, vector<36x8x16xf32>
    %c0_2 = arith.constant 0 : index
    %c1 = arith.constant 1 : index
    %c0_3 = arith.constant 0 : index
    %1 = tpu.strided_load %arg0[%c0_2, %c1, %c0_3] {strides = array<i32: 1, 2, 1>} : memref<36x18x16xf32, #tpu.memory_space<vmem>>, vector<36x8x16xf32>
    %2 = arith.maximumf %0, %1 : vector<36x8x16xf32>
    %c0_4 = arith.constant 0 : index
    %c2 = arith.constant 2 : index
    %c0_5 = arith.constant 0 : index
    %3 = tpu.strided_load %arg0[%c0_4, %c2, %c0_5] {strides = array<i32: 1, 2, 1>} : memref<36x18x16xf32, #tpu.memory_space<vmem>>, vector<36x8x16xf32>
    %4 = arith.maximumf %2, %3 : vector<36x8x16xf32>
    %c0_6 = arith.constant 0 : index
    %c0_7 = arith.constant 0 : index
    %c0_8 = arith.constant 0 : index
    %5 = vector.load %arg1[%c0_6, %c0_7, %c0_8] : memref<36x8x16xf32, #tpu.memory_space<vmem>>, vector<36x8x16xf32>
    tpu.vector_store %arg1[%c0_6, %c0_7, %c0_8], %4 {strides = array<i32>} : memref<36x8x16xf32, #tpu.memory_space<vmem>>, vector<36x8x16xf32>,
    return
  }
}

module attributes {stable_mosaic.version = 11 : i64} {
  func.func @_maxpool_h_kernel(%arg0: memref<2x18x128xf32, #tpu.memory_space<vmem>>, %arg1: memref<2x8x128xf32, #tpu.memory_space<vmem>>) attributes {dimension_semantics = [], scalar_prefetch = 0 : i64, scratch_operands = 0 : i64, tpu.core_type = #tpu.core_type<tc>} {
    %c0 = arith.constant 0 : index
    %c0_0 = arith.constant 0 : index
    %c0_1 = arith.constant 0 : index
    %0 = tpu.strided_load %arg0[%c0, %c0_0, %c0_1] {strides = array<i32: 1, 2, 1>} : memref<2x18x128xf32, #tpu.memory_space<vmem>>, vector<2x8x128xf32>
    %c0_2 = arith.constant 0 : index
    %c1 = arith.constant 1 : index
    %c0_3 = arith.constant 0 : index
    %1 = tpu.strided_load %arg0[%c0_2, %c1, %c0_3] {strides = array<i32: 1, 2, 1>} : memref<2x18x128xf32, #tpu.memory_space<vmem>>, vector<2x8x128xf32>
    %2 = arith.maximumf %0, %1 : vector<2x8x128xf32>
    %c0_4 = arith.constant 0 : index
    %c2 = arith.constant 2 : index
    %c0_5 = arith.constant 0 : index
    %3 = tpu.strided_load %arg0[%c0_4, %c2, %c0_5] {strides = array<i32: 1, 2, 1>} : memref<2x18x128xf32, #tpu.memory_space<vmem>>, vector<2x8x128xf32>
    %4 = arith.maximumf %2, %3 : vector<2x8x128xf32>
    %c0_6 = arith.constant 0 : index
    %c0_7 = arith.constant 0 : index
    %c0_8 = arith.constant 0 : index
    %5 = vector.load %arg1[%c0_6, %c0_7, %c0_8] : memref<2x8x128xf32, #tpu.memory_space<vmem>>, vector<2x8x128xf32>
    tpu.vector_store %arg1[%c0_6, %c0_7, %c0_8], %4 {strides = array<i32>} : memref<2x8x128xf32, #tpu.memory_space<vmem>>, vector<2x8x128xf32>,
    return
  }
}

module attributes {stable_mosaic.version = 11 : i64} {
  func.func @_gemm_bias_kernel(%arg0: i32, %arg1: memref<128x144xbf16, #tpu.memory_space<vmem>>, %arg2: memref<144x128xbf16, #tpu.memory_space<vmem>>, %arg3: memref<1x128xf32, #tpu.memory_space<vmem>>, %arg4: memref<128x128xf32, #tpu.memory_space<vmem>>) attributes {dimension_semantics = [#tpu.dimension_semantics<parallel>], iteration_bounds = array<i64: 1>, scalar_prefetch = 0 : i64, scratch_operands = 0 : i64, tpu.core_type = #tpu.core_type<tc>, window_params = [{transform_indices = @transform_0, window_bounds = array<i64: 128, 144>}, {pipeline_mode = #tpu.pipeline_mode<synchronous>, transform_indices = @transform_1, window_bounds = array<i64: 144, 128>}, {pipeline_mode = #tpu.pipeline_mode<synchronous>, transform_indices = @transform_2, window_bounds = array<i64: 1, 128>}, {transform_indices = @transform_3, window_bounds = array<i64: 128, 128>}]} {
    %c0 = arith.constant 0 : index
    %c0_0 = arith.constant 0 : index
    %0 = vector.load %arg1[%c0, %c0_0] : memref<128x144xbf16, #tpu.memory_space<vmem>>, vector<128x144xbf16>
    %c0_1 = arith.constant 0 : index
    %c0_2 = arith.constant 0 : index
    %1 = vector.load %arg2[%c0_1, %c0_2] : memref<144x128xbf16, #tpu.memory_space<vmem>>, vector<144x128xbf16>
    %cst = arith.constant dense<0.000000e+00> : vector<128x128xf32>
    %2 = tpu.matmul %0, %1, %cst {dimension_numbers = #tpu.dot_dimension_numbers<[1], [0], [0], [1], [0, 0, 1, 1], [], []>} : vector<128x144xbf16>, vector<144x128xbf16>, vector<128x128xf32> -> vector<128x128xf32>
    %c0_3 = arith.constant 0 : index
    %c0_4 = arith.constant 0 : index
    %3 = vector.load %arg3[%c0_3, %c0_4] : memref<1x128xf32, #tpu.memory_space<vmem>>, vector<1x128xf32>
    %4 = vector.broadcast %3 : vector<1x128xf32> to vector<128x128xf32>
    %5 = arith.addf %2, %4 : vector<128x128xf32>
    %cst_5 = arith.constant 0.000000e+00 : f32
    %6 = vector.broadcast %cst_5 : f32 to vector<128x128xf32>
    %7 = arith.maximumf %5, %6 : vector<128x128xf32>
    %c0_6 = arith.constant 0 : index
    %c0_7 = arith.constant 0 : index
    %8 = vector.load %arg4[%c0_6, %c0_7] : memref<128x128xf32, #tpu.memory_space<vmem>>, vector<128x128xf32>
    tpu.vector_store %arg4[%c0_6, %c0_7], %7 {strides = array<i32>} : memref<128x128xf32, #tpu.memory_space<vmem>>, vector<128x128xf32>,
    return
  }
  func.func @transform_0(%arg0: i32) -> (i32, i32) {
    %c0_i32 = arith.constant 0 : i32
    %c0_i32_0 = arith.constant 0 : i32
    return %arg0, %c0_i32 : i32, i32
  }
  func.func @transform_1(%arg0: i32) -> (i32, i32) {
    %c0_i32 = arith.constant 0 : i32
    %c0_i32_0 = arith.constant 0 : i32
    %c0_i32_1 = arith.constant 0 : i32
    return %c0_i32, %c0_i32_0 : i32, i32
  }
  func.func @transform_2(%arg0: i32) -> (i32, i32) {
    %c0_i32 = arith.constant 0 : i32
    %c0_i32_0 = arith.constant 0 : i32
    %c0_i32_1 = arith.constant 0 : i32
    return %c0_i32, %c0_i32_0 : i32, i32
  }
  func.func @transform_3(%arg0: i32) -> (i32, i32) {
    %c0_i32 = arith.constant 0 : i32
    %c0_i32_0 = arith.constant 0 : i32
    return %arg0, %c0_i32 : i32, i32
  }
}

module attributes {stable_mosaic.version = 11 : i64} {
  func.func @_gemm_bias_res_kernel(%arg0: i32, %arg1: memref<128x144xbf16, #tpu.memory_space<vmem>>, %arg2: memref<144x128xbf16, #tpu.memory_space<vmem>>, %arg3: memref<1x128xf32, #tpu.memory_space<vmem>>, %arg4: memref<128x128xf32, #tpu.memory_space<vmem>>, %arg5: memref<128x128xf32, #tpu.memory_space<vmem>>) attributes {dimension_semantics = [#tpu.dimension_semantics<parallel>], iteration_bounds = array<i64: 1>, scalar_prefetch = 0 : i64, scratch_operands = 0 : i64, tpu.core_type = #tpu.core_type<tc>, window_params = [{transform_indices = @transform_0, window_bounds = array<i64: 128, 144>}, {pipeline_mode = #tpu.pipeline_mode<synchronous>, transform_indices = @transform_1, window_bounds = array<i64: 144, 128>}, {pipeline_mode = #tpu.pipeline_mode<synchronous>, transform_indices = @transform_2, window_bounds = array<i64: 1, 128>}, {transform_indices = @transform_3, window_bounds = array<i64: 128, 128>}, {transform_indices = @transform_4, window_bounds = array<i64: 128, 128>}]} {
    %c0 = arith.constant 0 : index
    %c0_0 = arith.constant 0 : index
    %0 = vector.load %arg1[%c0, %c0_0] : memref<128x144xbf16, #tpu.memory_space<vmem>>, vector<128x144xbf16>
    %c0_1 = arith.constant 0 : index
    %c0_2 = arith.constant 0 : index
    %1 = vector.load %arg2[%c0_1, %c0_2] : memref<144x128xbf16, #tpu.memory_space<vmem>>, vector<144x128xbf16>
    %cst = arith.constant dense<0.000000e+00> : vector<128x128xf32>
    %2 = tpu.matmul %0, %1, %cst {dimension_numbers = #tpu.dot_dimension_numbers<[1], [0], [0], [1], [0, 0, 1, 1], [], []>} : vector<128x144xbf16>, vector<144x128xbf16>, vector<128x128xf32> -> vector<128x128xf32>
    %c0_3 = arith.constant 0 : index
    %c0_4 = arith.constant 0 : index
    %3 = vector.load %arg3[%c0_3, %c0_4] : memref<1x128xf32, #tpu.memory_space<vmem>>, vector<1x128xf32>
    %4 = vector.broadcast %3 : vector<1x128xf32> to vector<128x128xf32>
    %5 = arith.addf %2, %4 : vector<128x128xf32>
    %c0_5 = arith.constant 0 : index
    %c0_6 = arith.constant 0 : index
    %6 = vector.load %arg4[%c0_5, %c0_6] : memref<128x128xf32, #tpu.memory_space<vmem>>, vector<128x128xf32>
    %7 = arith.addf %5, %6 : vector<128x128xf32>
    %cst_7 = arith.constant 0.000000e+00 : f32
    %8 = vector.broadcast %cst_7 : f32 to vector<128x128xf32>
    %9 = arith.maximumf %7, %8 : vector<128x128xf32>
    %c0_8 = arith.constant 0 : index
    %c0_9 = arith.constant 0 : index
    %10 = vector.load %arg5[%c0_8, %c0_9] : memref<128x128xf32, #tpu.memory_space<vmem>>, vector<128x128xf32>
    tpu.vector_store %arg5[%c0_8, %c0_9], %9 {strides = array<i32>} : memref<128x128xf32, #tpu.memory_space<vmem>>, vector<128x128xf32>,
    return
  }
  func.func @transform_0(%arg0: i32) -> (i32, i32) {
    %c0_i32 = arith.constant 0 : i32
    %c0_i32_0 = arith.constant 0 : i32
    return %arg0, %c0_i32 : i32, i32
  }
  func.func @transform_1(%arg0: i32) -> (i32, i32) {
    %c0_i32 = arith.constant 0 : i32
    %c0_i32_0 = arith.constant 0 : i32
    %c0_i32_1 = arith.constant 0 : i32
    return %c0_i32, %c0_i32_0 : i32, i32
  }
  func.func @transform_2(%arg0: i32) -> (i32, i32) {
    %c0_i32 = arith.constant 0 : i32
    %c0_i32_0 = arith.constant 0 : i32
    %c0_i32_1 = arith.constant 0 : i32
    return %c0_i32, %c0_i32_0 : i32, i32
  }
  func.func @transform_3(%arg0: i32) -> (i32, i32) {
    %c0_i32 = arith.constant 0 : i32
    %c0_i32_0 = arith.constant 0 : i32
    return %arg0, %c0_i32 : i32, i32
  }
  func.func @transform_4(%arg0: i32) -> (i32, i32) {
    %c0_i32 = arith.constant 0 : i32
    %c0_i32_0 = arith.constant 0 : i32
    return %arg0, %c0_i32 : i32, i32
  }
}

module attributes {stable_mosaic.version = 11 : i64} {
  func.func @_gemm_bias_kernel(%arg0: i32, %arg1: memref<32x144xbf16, #tpu.memory_space<vmem>>, %arg2: memref<144x128xbf16, #tpu.memory_space<vmem>>, %arg3: memref<1x128xf32, #tpu.memory_space<vmem>>, %arg4: memref<32x128xf32, #tpu.memory_space<vmem>>) attributes {dimension_semantics = [#tpu.dimension_semantics<parallel>], iteration_bounds = array<i64: 1>, scalar_prefetch = 0 : i64, scratch_operands = 0 : i64, tpu.core_type = #tpu.core_type<tc>, window_params = [{transform_indices = @transform_0, window_bounds = array<i64: 32, 144>}, {pipeline_mode = #tpu.pipeline_mode<synchronous>, transform_indices = @transform_1, window_bounds = array<i64: 144, 128>}, {pipeline_mode = #tpu.pipeline_mode<synchronous>, transform_indices = @transform_2, window_bounds = array<i64: 1, 128>}, {transform_indices = @transform_3, window_bounds = array<i64: 32, 128>}]} {
    %c0 = arith.constant 0 : index
    %c0_0 = arith.constant 0 : index
    %0 = vector.load %arg1[%c0, %c0_0] : memref<32x144xbf16, #tpu.memory_space<vmem>>, vector<32x144xbf16>
    %c0_1 = arith.constant 0 : index
    %c0_2 = arith.constant 0 : index
    %1 = vector.load %arg2[%c0_1, %c0_2] : memref<144x128xbf16, #tpu.memory_space<vmem>>, vector<144x128xbf16>
    %cst = arith.constant dense<0.000000e+00> : vector<32x128xf32>
    %2 = tpu.matmul %0, %1, %cst {dimension_numbers = #tpu.dot_dimension_numbers<[1], [0], [0], [1], [0, 0, 1, 1], [], []>} : vector<32x144xbf16>, vector<144x128xbf16>, vector<32x128xf32> -> vector<32x128xf32>
    %c0_3 = arith.constant 0 : index
    %c0_4 = arith.constant 0 : index
    %3 = vector.load %arg3[%c0_3, %c0_4] : memref<1x128xf32, #tpu.memory_space<vmem>>, vector<1x128xf32>
    %4 = vector.broadcast %3 : vector<1x128xf32> to vector<32x128xf32>
    %5 = arith.addf %2, %4 : vector<32x128xf32>
    %6 = tpu.iota {dimensions = array<i32: 1>} : vector<32x128xi32>
    %c32_i32 = arith.constant 32 : i32
    %7 = vector.broadcast %c32_i32 : i32 to vector<32x128xi32>
    %8 = arith.cmpi slt, %6, %7 : vector<32x128xi32>
    %cst_5 = arith.constant 0.000000e+00 : f32
    %9 = vector.broadcast %cst_5 : f32 to vector<32x128xf32>
    %10 = arith.maximumf %5, %9 : vector<32x128xf32>
    %11 = arith.select %8, %10, %5 : vector<32x128xi1>, vector<32x128xf32>
    %c0_6 = arith.constant 0 : index
    %c0_7 = arith.constant 0 : index
    %12 = vector.load %arg4[%c0_6, %c0_7] : memref<32x128xf32, #tpu.memory_space<vmem>>, vector<32x128xf32>
    tpu.vector_store %arg4[%c0_6, %c0_7], %11 {strides = array<i32>} : memref<32x128xf32, #tpu.memory_space<vmem>>, vector<32x128xf32>,
    return
  }
  func.func @transform_0(%arg0: i32) -> (i32, i32) {
    %c0_i32 = arith.constant 0 : i32
    %c0_i32_0 = arith.constant 0 : i32
    return %arg0, %c0_i32 : i32, i32
  }
  func.func @transform_1(%arg0: i32) -> (i32, i32) {
    %c0_i32 = arith.constant 0 : i32
    %c0_i32_0 = arith.constant 0 : i32
    %c0_i32_1 = arith.constant 0 : i32
    return %c0_i32, %c0_i32_0 : i32, i32
  }
  func.func @transform_2(%arg0: i32) -> (i32, i32) {
    %c0_i32 = arith.constant 0 : i32
    %c0_i32_0 = arith.constant 0 : i32
    %c0_i32_1 = arith.constant 0 : i32
    return %c0_i32, %c0_i32_0 : i32, i32
  }
  func.func @transform_3(%arg0: i32) -> (i32, i32) {
    %c0_i32 = arith.constant 0 : i32
    %c0_i32_0 = arith.constant 0 : i32
    return %arg0, %c0_i32 : i32, i32
  }
}

module attributes {stable_mosaic.version = 11 : i64} {
  func.func @_gemm_bias_res_kernel(%arg0: i32, %arg1: memref<32x288xbf16, #tpu.memory_space<vmem>>, %arg2: memref<288x128xbf16, #tpu.memory_space<vmem>>, %arg3: memref<1x128xf32, #tpu.memory_space<vmem>>, %arg4: memref<32x128xf32, #tpu.memory_space<vmem>>, %arg5: memref<32x128xf32, #tpu.memory_space<vmem>>) attributes {dimension_semantics = [#tpu.dimension_semantics<parallel>], iteration_bounds = array<i64: 1>, scalar_prefetch = 0 : i64, scratch_operands = 0 : i64, tpu.core_type = #tpu.core_type<tc>, window_params = [{transform_indices = @transform_0, window_bounds = array<i64: 32, 288>}, {pipeline_mode = #tpu.pipeline_mode<synchronous>, transform_indices = @transform_1, window_bounds = array<i64: 288, 128>}, {pipeline_mode = #tpu.pipeline_mode<synchronous>, transform_indices = @transform_2, window_bounds = array<i64: 1, 128>}, {transform_indices = @transform_3, window_bounds = array<i64: 32, 128>}, {transform_indices = @transform_4, window_bounds = array<i64: 32, 128>}]} {
    %c0 = arith.constant 0 : index
    %c0_0 = arith.constant 0 : index
    %0 = vector.load %arg1[%c0, %c0_0] : memref<32x288xbf16, #tpu.memory_space<vmem>>, vector<32x288xbf16>
    %c0_1 = arith.constant 0 : index
    %c0_2 = arith.constant 0 : index
    %1 = vector.load %arg2[%c0_1, %c0_2] : memref<288x128xbf16, #tpu.memory_space<vmem>>, vector<288x128xbf16>
    %cst = arith.constant dense<0.000000e+00> : vector<32x128xf32>
    %2 = tpu.matmul %0, %1, %cst {dimension_numbers = #tpu.dot_dimension_numbers<[1], [0], [0], [1], [0, 0, 1, 1], [], []>} : vector<32x288xbf16>, vector<288x128xbf16>, vector<32x128xf32> -> vector<32x128xf32>
    %c0_3 = arith.constant 0 : index
    %c0_4 = arith.constant 0 : index
    %3 = vector.load %arg3[%c0_3, %c0_4] : memref<1x128xf32, #tpu.memory_space<vmem>>, vector<1x128xf32>
    %4 = vector.broadcast %3 : vector<1x128xf32> to vector<32x128xf32>
    %5 = arith.addf %2, %4 : vector<32x128xf32>
    %c0_5 = arith.constant 0 : index
    %c0_6 = arith.constant 0 : index
    %6 = vector.load %arg4[%c0_5, %c0_6] : memref<32x128xf32, #tpu.memory_space<vmem>>, vector<32x128xf32>
    %7 = arith.addf %5, %6 : vector<32x128xf32>
    %cst_7 = arith.constant 0.000000e+00 : f32
    %8 = vector.broadcast %cst_7 : f32 to vector<32x128xf32>
    %9 = arith.maximumf %7, %8 : vector<32x128xf32>
    %c0_8 = arith.constant 0 : index
    %c0_9 = arith.constant 0 : index
    %10 = vector.load %arg5[%c0_8, %c0_9] : memref<32x128xf32, #tpu.memory_space<vmem>>, vector<32x128xf32>
    tpu.vector_store %arg5[%c0_8, %c0_9], %9 {strides = array<i32>} : memref<32x128xf32, #tpu.memory_space<vmem>>, vector<32x128xf32>,
    return
  }
  func.func @transform_0(%arg0: i32) -> (i32, i32) {
    %c0_i32 = arith.constant 0 : i32
    %c0_i32_0 = arith.constant 0 : i32
    return %arg0, %c0_i32 : i32, i32
  }
  func.func @transform_1(%arg0: i32) -> (i32, i32) {
    %c0_i32 = arith.constant 0 : i32
    %c0_i32_0 = arith.constant 0 : i32
    %c0_i32_1 = arith.constant 0 : i32
    return %c0_i32, %c0_i32_0 : i32, i32
  }
  func.func @transform_2(%arg0: i32) -> (i32, i32) {
    %c0_i32 = arith.constant 0 : i32
    %c0_i32_0 = arith.constant 0 : i32
    %c0_i32_1 = arith.constant 0 : i32
    return %c0_i32, %c0_i32_0 : i32, i32
  }
  func.func @transform_3(%arg0: i32) -> (i32, i32) {
    %c0_i32 = arith.constant 0 : i32
    %c0_i32_0 = arith.constant 0 : i32
    return %arg0, %c0_i32 : i32, i32
  }
  func.func @transform_4(%arg0: i32) -> (i32, i32) {
    %c0_i32 = arith.constant 0 : i32
    %c0_i32_0 = arith.constant 0 : i32
    return %arg0, %c0_i32 : i32, i32
  }
}

module attributes {stable_mosaic.version = 11 : i64} {
  func.func @_global_avg_pool_kernel(%arg0: memref<2x16x128xf32, #tpu.memory_space<vmem>>, %arg1: memref<2x128xf32, #tpu.memory_space<vmem>>) attributes {dimension_semantics = [], scalar_prefetch = 0 : i64, scratch_operands = 0 : i64, tpu.core_type = #tpu.core_type<tc>} {
    %c0 = arith.constant 0 : index
    %c0_0 = arith.constant 0 : index
    %c0_1 = arith.constant 0 : index
    %0 = vector.load %arg0[%c0, %c0_0, %c0_1] : memref<2x16x128xf32, #tpu.memory_space<vmem>>, vector<2x16x128xf32>
    %cst = arith.constant dense<0.000000e+00> : vector<2x128xf32>
    %1 = vector.multi_reduction <add>, %0, %cst [1] : vector<2x16x128xf32> to vector<2x128xf32>
    %cst_2 = arith.constant 6.250000e-02 : f32
    %2 = vector.broadcast %cst_2 : f32 to vector<2x128xf32>
    %3 = arith.mulf %1, %2 : vector<2x128xf32>
    %c0_3 = arith.constant 0 : index
    %c0_4 = arith.constant 0 : index
    %4 = vector.load %arg1[%c0_3, %c0_4] : memref<2x128xf32, #tpu.memory_space<vmem>>, vector<2x128xf32>
    tpu.vector_store %arg1[%c0_3, %c0_4], %3 {strides = array<i32>} : memref<2x128xf32, #tpu.memory_space<vmem>>, vector<2x128xf32>,
    return
  }
}

</mosaic_0001>

<bundles_post_ra>
// kernel: visual_model_forward.9
= control target key start
LH: loop header
LB: loop body
LE: loop exit
PB: predicated region body
PF: predicated region fallthrough
CT: control target
= control target key end

     0   :  { %vm295_vm0 = vcmask 130048   ;;  %s921_s0 = inlined_call_operand.vmem [shape: f32[36,18,16], index: 0, kind: input, shape index: {}]   ;;  %s922_s1 = inlined_call_operand.vmem [shape: f32[36,8,16], index: 1, kind: output, shape index: {}]  }
   0x1   :  { %v8_v0 = vld [vmem:[%s921_s0] ss:$2 sm:$0xff]  ;;  %v371_v1 = vld [vmem:[%s921_s0 + $0x1] ss:$2 sm:$0xff]  ;;  %v337_v8 = vld [vmem:[%s921_s0 + $0x30] ss:$2 sm:$0xff] }
   0x2   :  { %v407_v2 = vld [vmem:[%s921_s0 + $0x2] ss:$2 sm:$0xff]  ;;  %v151_v3 = vmax.f32 %v8_v0, %v371_v1  ;;  %v372_v5 = vld [vmem:[%s921_s0 + $0x19] ss:$2 sm:$0xff]  ;;  %v409_v10 = vld [vmem:[%s921_s0 + $0x32] ss:$2 sm:$0xff] }
   0x3   :  { %v336_v4 = vld [vmem:[%s921_s0 + $0x18] ss:$2 sm:$0xff]  ;;  %v373_v9 = vld [vmem:[%s921_s0 + $0x31] ss:$2 sm:$0xff]  ;;  %v338_v13 = vld [vmem:[%s921_s0 + $0x48] ss:$2 sm:$0xff] }
   0x4   :  { %v408_v6 = vld [vmem:[%s921_s0 + $0x1a] ss:$2 sm:$0xff]  ;;  %v152_v7 = vmax.f32 %v336_v4, %v372_v5  ;;  %v259_v11 = vmax.f32 %v151_v3, %v407_v2  ;;  %v153_v12 = vmax.f32 %v337_v8, %v373_v9  ;;  %v374_v14 = vld [vmem:[%s921_s0 + $0x49] ss:$2 sm:$0xff]  ;;  %v410_v15 = vld [vmem:[%s921_s0 + $0x4a] ss:$2 sm:$0xff] }
   0x5   :  { %v154_v17 = vmax.f32 %v338_v13, %v374_v14  ;;  %v339_v18 = vld [vmem:[%s921_s0 + $0x60] ss:$2 sm:$0xff]  ;;  %v375_v19 = vld [vmem:[%s921_s0 + $0x61] ss:$2 sm:$0xff]  ;;  %v341_v28 = vld [vmem:[%s921_s0 + $0x90] ss:$2 sm:$0xff] }
   0x6   :  { %v260_v16 = vmax.f32 %v152_v7, %v408_v6  ;;  %v411_v20 = vld [vmem:[%s921_s0 + $0x62] ss:$2 sm:$0xff]  ;;  %296 = vst.msk [vmem:[%s922_s1] sm:$0xff] %vm295_vm0, %v259_v11  ;;  %v261_v21 = vmax.f32 %v153_v12, %v409_v10  ;;  %v155_v22 = vmax.f32 %v339_v18, %v375_v19  ;;  %v376_v24 = vld [vmem:[%s921_s0 + $0x79] ss:$2 sm:$0xff] }
   0x7   :  { %v340_v23 = vld [vmem:[%s921_s0 + $0x78] ss:$2 sm:$0xff]  ;;  %v262_v26 = vmax.f32 %v154_v17, %v410_v15  ;;  %v377_v29 = vld [vmem:[%s921_s0 + $0x91] ss:$2 sm:$0xff]  ;;  %v342_v33 = vld [vmem:[%s921_s0 + $0xa8] ss:$2 sm:$0xff] }
   0x8   :  { %v412_v25 = vld [vmem:[%s921_s0 + $0x7a] ss:$2 sm:$0xff]  ;;  %297 = vst.msk [vmem:[%s922_s1 + $0x8] sm:$0xff] %vm295_vm0, %v260_v16  ;;  %v156_v27 = vmax.f32 %v340_v23, %v376_v24  ;;  %298 = vst.msk [vmem:[%s922_s1 + $0x10] sm:$0xff] %vm295_vm0, %v261_v21  ;;  %v263_v31 = vmax.f32 %v155_v22, %v411_v20  ;;  %v157_v32 = vmax.f32 %v341_v28, %v377_v29  ;;  %v378_v34 = vld [vmem:[%s921_s0 + $0xa9] ss:$2 sm:$0xff] }
   0x9   :  { %v413_v30 = vld [vmem:[%s921_s0 + $0x92] ss:$2 sm:$0xff]  ;;  %299 = vst.msk [vmem:[%s922_s1 + $0x18] sm:$0xff] %vm295_vm0, %v262_v26  ;;  %v158_v37 = vmax.f32 %v342_v33, %v378_v34  ;;  %v379_v39 = vld [vmem:[%s921_s0 + $0xc1] ss:$2 sm:$0xff] }
   0xa   :  { %v414_v35 = vld [vmem:[%s921_s0 + $0xaa] ss:$2 sm:$0xff]  ;;  %v264_v36 = vmax.f32 %v156_v27, %v412_v25  ;;  %300 = vst.msk [vmem:[%s922_s1 + $0x20] sm:$0xff] %vm295_vm0, %v263_v31  ;;  %v265_v41 = vmax.f32 %v157_v32, %v413_v30  ;;  %v380_v44 = vld [vmem:[%s921_s0 + $0xd9] ss:$2 sm:$0xff] }
   0xb   :  { %v343_v38 = vld [vmem:[%s921_s0 + $0xc0] ss:$2 sm:$0xff]  ;;  %v266_v46 = vmax.f32 %v158_v37, %v414_v35  ;;  %v345_v48 = vld [vmem:[%s921_s0 + $0xf0] ss:$2 sm:$0xff]  ;;  %v381_v49 = vld [vmem:[%s921_s0 + $0xf1] ss:$2 sm:$0xff] }
   0xc   :  { %v415_v40 = vld [vmem:[%s921_s0 + $0xc2] ss:$2 sm:$0xff]  ;;  %v159_v42 = vmax.f32 %v343_v38, %v379_v39  ;;  %301 = vst.msk [vmem:[%s922_s1 + $0x28] sm:$0xff] %vm295_vm0, %v264_v36  ;;  %v417_v50 = vld [vmem:[%s921_s0 + $0xf2] ss:$2 sm:$0xff]  ;;  %302 = vst.msk [vmem:[%s922_s1 + $0x30] sm:$0xff] %vm295_vm0, %v265_v41  ;;  %v161_v52 = vmax.f32 %v345_v48, %v381_v49 }
   0xd   :  { %v344_v43 = vld [vmem:[%s921_s0 + $0xd8] ss:$2 sm:$0xff]  ;;  %v346_v53 = vld [vmem:[%s921_s0 + $0x108] ss:$2 sm:$0xff]  ;;  %v382_v54 = vld [vmem:[%s921_s0 + $0x109] ss:$2 sm:$0xff] }
   0xe   :  { %v416_v45 = vld [vmem:[%s921_s0 + $0xda] ss:$2 sm:$0xff]  ;;  %v160_v47 = vmax.f32 %v344_v43, %v380_v44  ;;  %v267_v51 = vmax.f32 %v159_v42, %v415_v40  ;;  %v418_v55 = vld [vmem:[%s921_s0 + $0x10a] ss:$2 sm:$0xff]  ;;  %303 = vst.msk [vmem:[%s922_s1 + $0x38] sm:$0xff] %vm295_vm0, %v266_v46  ;;  %v162_v57 = vmax.f32 %v346_v53, %v382_v54  ;;  %v269_v61 = vmax.f32 %v161_v52, %v417_v50 }
   0xf   :  { %v347_v58 = vld [vmem:[%s921_s0 + $0x120] ss:$2 sm:$0xff]  ;;  %v383_v59 = vld [vmem:[%s921_s0 + $0x121] ss:$2 sm:$0xff]  ;;  %v349_v4 = vld [vmem:[%s921_s0 + $0x150] ss:$2 sm:$0xff] }
  0x10   :  { %v268_v56 = vmax.f32 %v160_v47, %v416_v45  ;;  %v419_v60 = vld [vmem:[%s921_s0 + $0x122] ss:$2 sm:$0xff]  ;;  %304 = vst.msk [vmem:[%s922_s1 + $0x40] sm:$0xff] %vm295_vm0, %v267_v51  ;;  %v163_v62 = vmax.f32 %v347_v58, %v383_v59  ;;  %v384_v0 = vld [vmem:[%s921_s0 + $0x139] ss:$2 sm:$0xff]  ;;  %v270_v2 = vmax.f32 %v162_v57, %v418_v55  ;;  %306 = vst.msk [vmem:[%s922_s1 + $0x50] sm:$0xff] %vm295_vm0, %v269_v61 }
  0x11   :  { %v348_v63 = vld [vmem:[%s921_s0 + $0x138] ss:$2 sm:$0xff]  ;;  %v385_v5 = vld [vmem:[%s921_s0 + $0x151] ss:$2 sm:$0xff]  ;;  %v350_v9 = vld [vmem:[%s921_s0 + $0x168] ss:$2 sm:$0xff] }
  0x12   :  { %v420_v1 = vld [vmem:[%s921_s0 + $0x13a] ss:$2 sm:$0xff]  ;;  %305 = vst.msk [vmem:[%s922_s1 + $0x48] sm:$0xff] %vm295_vm0, %v268_v56  ;;  %v164_v3 = vmax.f32 %v348_v63, %v384_v0  ;;  %v271_v7 = vmax.f32 %v163_v62, %v419_v60  ;;  %v165_v8 = vmax.f32 %v349_v4, %v385_v5  ;;  %v386_v10 = vld [vmem:[%s921_s0 + $0x169] ss:$2 sm:$0xff]  ;;  %307 = vst.msk [vmem:[%s922_s1 + $0x58] sm:$0xff] %vm295_vm0, %v270_v2 }
  0x13   :  { %v421_v6 = vld [vmem:[%s921_s0 + $0x152] ss:$2 sm:$0xff]  ;;  %v166_v13 = vmax.f32 %v350_v9, %v386_v10  ;;  %v387_v15 = vld [vmem:[%s921_s0 + $0x181] ss:$2 sm:$0xff]  ;;  %v423_v16 = vld [vmem:[%s921_s0 + $0x182] ss:$2 sm:$0xff] }
  0x14   :  { %v422_v11 = vld [vmem:[%s921_s0 + $0x16a] ss:$2 sm:$0xff]  ;;  %v272_v12 = vmax.f32 %v164_v3, %v420_v1  ;;  %308 = vst.msk [vmem:[%s922_s1 + $0x60] sm:$0xff] %vm295_vm0, %v271_v7  ;;  %v273_v17 = vmax.f32 %v165_v8, %v421_v6  ;;  %v388_v20 = vld [vmem:[%s921_s0 + $0x199] ss:$2 sm:$0xff] }
  0x15   :  { %v351_v14 = vld [vmem:[%s921_s0 + $0x180] ss:$2 sm:$0xff]  ;;  %v274_v22 = vmax.f32 %v166_v13, %v422_v11  ;;  %v353_v24 = vld [vmem:[%s921_s0 + $0x1b0] ss:$2 sm:$0xff]  ;;  %v389_v25 = vld [vmem:[%s921_s0 + $0x1b1] ss:$2 sm:$0xff] }
  0x16   :  { %v167_v18 = vmax.f32 %v351_v14, %v387_v15  ;;  %v352_v19 = vld [vmem:[%s921_s0 + $0x198] ss:$2 sm:$0xff]  ;;  %309 = vst.msk [vmem:[%s922_s1 + $0x68] sm:$0xff] %vm295_vm0, %v272_v12  ;;  %310 = vst.msk [vmem:[%s922_s1 + $0x70] sm:$0xff] %vm295_vm0, %v273_v17  ;;  %v169_v28 = vmax.f32 %v353_v24, %v389_v25  ;;  %v354_v29 = vld [vmem:[%s921_s0 + $0x1c8] ss:$2 sm:$0xff] }
  0x17   :  { %v424_v21 = vld [vmem:[%s921_s0 + $0x19a] ss:$2 sm:$0xff]  ;;  %v168_v23 = vmax.f32 %v352_v19, %v388_v20  ;;  %v390_v30 = vld [vmem:[%s921_s0 + $0x1c9] ss:$2 sm:$0xff]  ;;  %v426_v31 = vld [vmem:[%s921_s0 + $0x1ca] ss:$2 sm:$0xff] }
  0x18   :  { %v425_v26 = vld [vmem:[%s921_s0 + $0x1b2] ss:$2 sm:$0xff]  ;;  %v275_v27 = vmax.f32 %v167_v18, %v423_v16  ;;  %311 = vst.msk [vmem:[%s922_s1 + $0x78] sm:$0xff] %vm295_vm0, %v274_v22  ;;  %v170_v33 = vmax.f32 %v354_v29, %v390_v30  ;;  %v391_v35 = vld [vmem:[%s921_s0 + $0x1e1] ss:$2 sm:$0xff] }
  0x19   :  { %v276_v32 = vmax.f32 %v168_v23, %v424_v21  ;;  %v355_v34 = vld [vmem:[%s921_s0 + $0x1e0] ss:$2 sm:$0xff]  ;;  %v277_v37 = vmax.f32 %v169_v28, %v425_v26  ;;  %v392_v40 = vld [vmem:[%s921_s0 + $0x1f9] ss:$2 sm:$0xff]  ;;  %v357_v44 = vld [vmem:[%s921_s0 + $0x210] ss:$2 sm:$0xff] }
  0x1a   :  { %v427_v36 = vld [vmem:[%s921_s0 + $0x1e2] ss:$2 sm:$0xff]  ;;  %312 = vst.msk [vmem:[%s922_s1 + $0x80] sm:$0xff] %vm295_vm0, %v275_v27  ;;  %v171_v38 = vmax.f32 %v355_v34, %v391_v35  ;;  %v278_v42 = vmax.f32 %v170_v33, %v426_v31  ;;  %v393_v45 = vld [vmem:[%s921_s0 + $0x211] ss:$2 sm:$0xff] }
  0x1b   :  { %v356_v39 = vld [vmem:[%s921_s0 + $0x1f8] ss:$2 sm:$0xff]  ;;  %313 = vst.msk [vmem:[%s922_s1 + $0x88] sm:$0xff] %vm295_vm0, %v276_v32  ;;  %314 = vst.msk [vmem:[%s922_s1 + $0x90] sm:$0xff] %vm295_vm0, %v277_v37  ;;  %v173_v48 = vmax.f32 %v357_v44, %v393_v45  ;;  %v358_v49 = vld [vmem:[%s921_s0 + $0x228] ss:$2 sm:$0xff] }
  0x1c   :  { %v428_v41 = vld [vmem:[%s921_s0 + $0x1fa] ss:$2 sm:$0xff]  ;;  %v172_v43 = vmax.f32 %v356_v39, %v392_v40  ;;  %v279_v47 = vmax.f32 %v171_v38, %v427_v36  ;;  %v394_v50 = vld [vmem:[%s921_s0 + $0x229] ss:$2 sm:$0xff]  ;;  %v430_v51 = vld [vmem:[%s921_s0 + $0x22a] ss:$2 sm:$0xff] }
  0x1d   :  { %v429_v46 = vld [vmem:[%s921_s0 + $0x212] ss:$2 sm:$0xff]  ;;  %315 = vst.msk [vmem:[%s922_s1 + $0x98] sm:$0xff] %vm295_vm0, %v278_v42  ;;  %v174_v53 = vmax.f32 %v358_v49, %v394_v50  ;;  %v395_v55 = vld [vmem:[%s921_s0 + $0x241] ss:$2 sm:$0xff] }
  0x1e   :  { %v280_v52 = vmax.f32 %v172_v43, %v428_v41  ;;  %v359_v54 = vld [vmem:[%s921_s0 + $0x240] ss:$2 sm:$0xff]  ;;  %316 = vst.msk [vmem:[%s922_s1 + $0xa0] sm:$0xff] %vm295_vm0, %v279_v47  ;;  %v281_v57 = vmax.f32 %v173_v48, %v429_v46  ;;  %v396_v60 = vld [vmem:[%s921_s0 + $0x259] ss:$2 sm:$0xff] }
  0x1f   :  { %v431_v56 = vld [vmem:[%s921_s0 + $0x242] ss:$2 sm:$0xff]  ;;  %v175_v58 = vmax.f32 %v359_v54, %v395_v55  ;;  %v282_v62 = vmax.f32 %v174_v53, %v430_v51  ;;  %v397_v1 = vld [vmem:[%s921_s0 + $0x271] ss:$2 sm:$0xff]  ;;  %v433_v2 = vld [vmem:[%s921_s0 + $0x272] ss:$2 sm:$0xff] }
  0x20   :  { %v360_v59 = vld [vmem:[%s921_s0 + $0x258] ss:$2 sm:$0xff]  ;;  %317 = vst.msk [vmem:[%s922_s1 + $0xa8] sm:$0xff] %vm295_vm0, %v280_v52  ;;  %318 = vst.msk [vmem:[%s922_s1 + $0xb0] sm:$0xff] %vm295_vm0, %v281_v57  ;;  %v362_v5 = vld [vmem:[%s921_s0 + $0x288] ss:$2 sm:$0xff] }
  0x21   :  { %v432_v61 = vld [vmem:[%s921_s0 + $0x25a] ss:$2 sm:$0xff]  ;;  %v176_v63 = vmax.f32 %v360_v59, %v396_v60  ;;  %v283_v3 = vmax.f32 %v175_v58, %v431_v56  ;;  %v398_v6 = vld [vmem:[%s921_s0 + $0x289] ss:$2 sm:$0xff]  ;;  %v434_v7 = vld [vmem:[%s921_s0 + $0x28a] ss:$2 sm:$0xff] }
  0x22   :  { %v361_v0 = vld [vmem:[%s921_s0 + $0x270] ss:$2 sm:$0xff]  ;;  %319 = vst.msk [vmem:[%s922_s1 + $0xb8] sm:$0xff] %vm295_vm0, %v282_v62  ;;  %v178_v9 = vmax.f32 %v362_v5, %v398_v6  ;;  %v363_v10 = vld [vmem:[%s921_s0 + $0x2a0] ss:$2 sm:$0xff] }
  0x23   :  { %v177_v4 = vmax.f32 %v361_v0, %v397_v1  ;;  %v284_v8 = vmax.f32 %v176_v63, %v432_v61  ;;  %v399_v11 = vld [vmem:[%s921_s0 + $0x2a1] ss:$2 sm:$0xff]  ;;  %v435_v12 = vld [vmem:[%s921_s0 + $0x2a2] ss:$2 sm:$0xff]  ;;  %320 = vst.msk [vmem:[%s922_s1 + $0xc0] sm:$0xff] %vm295_vm0, %v283_v3 }
  0x24   :  { %v179_v14 = vmax.f32 %v363_v10, %v399_v11  ;;  %v364_v15 = vld [vmem:[%s921_s0 + $0x2b8] ss:$2 sm:$0xff]  ;;  %v400_v16 = vld [vmem:[%s921_s0 + $0x2b9] ss:$2 sm:$0xff]  ;;  %v286_v18 = vmax.f32 %v178_v9, %v434_v7  ;;  %v366_v25 = vld [vmem:[%s921_s0 + $0x2e8] ss:$2 sm:$0xff] }
  0x25   :  { %v285_v13 = vmax.f32 %v177_v4, %v433_v2  ;;  %v436_v17 = vld [vmem:[%s921_s0 + $0x2ba] ss:$2 sm:$0xff]  ;;  %321 = vst.msk [vmem:[%s922_s1 + $0xc8] sm:$0xff] %vm295_vm0, %v284_v8  ;;  %v180_v19 = vmax.f32 %v364_v15, %v400_v16  ;;  %v401_v21 = vld [vmem:[%s921_s0 + $0x2d1] ss:$2 sm:$0xff] }
  0x26   :  { %v365_v20 = vld [vmem:[%s921_s0 + $0x2d0] ss:$2 sm:$0xff]  ;;  %v287_v23 = vmax.f32 %v179_v14, %v435_v12  ;;  %v402_v26 = vld [vmem:[%s921_s0 + $0x2e9] ss:$2 sm:$0xff]  ;;  %323 = vst.msk [vmem:[%s922_s1 + $0xd8] sm:$0xff] %vm295_vm0, %v286_v18 }
  0x27   :  { %v437_v22 = vld [vmem:[%s921_s0 + $0x2d2] ss:$2 sm:$0xff]  ;;  %322 = vst.msk [vmem:[%s922_s1 + $0xd0] sm:$0xff] %vm295_vm0, %v285_v13  ;;  %v181_v24 = vmax.f32 %v365_v20, %v401_v21  ;;  %v288_v28 = vmax.f32 %v180_v19, %v436_v17  ;;  %v182_v29 = vmax.f32 %v366_v25, %v402_v26  ;;  %v403_v31 = vld [vmem:[%s921_s0 + $0x301] ss:$2 sm:$0xff] }
  0x28   :  { %v438_v27 = vld [vmem:[%s921_s0 + $0x2ea] ss:$2 sm:$0xff]  ;;  %324 = vst.msk [vmem:[%s922_s1 + $0xe0] sm:$0xff] %vm295_vm0, %v287_v23  ;;  %v404_v36 = vld [vmem:[%s921_s0 + $0x319] ss:$2 sm:$0xff] }
  0x29   :  { %v367_v30 = vld [vmem:[%s921_s0 + $0x300] ss:$2 sm:$0xff]  ;;  %v289_v33 = vmax.f32 %v181_v24, %v437_v22  ;;  %325 = vst.msk [vmem:[%s922_s1 + $0xe8] sm:$0xff] %vm295_vm0, %v288_v28  ;;  %v290_v38 = vmax.f32 %v182_v29, %v438_v27  ;;  %v369_v40 = vld [vmem:[%s921_s0 + $0x330] ss:$2 sm:$0xff] }
  0x2a   :  { %v439_v32 = vld [vmem:[%s921_s0 + $0x302] ss:$2 sm:$0xff]  ;;  %v183_v34 = vmax.f32 %v367_v30, %v403_v31  ;;  %v405_v41 = vld [vmem:[%s921_s0 + $0x331] ss:$2 sm:$0xff]  ;;  %v441_v42 = vld [vmem:[%s921_s0 + $0x332] ss:$2 sm:$0xff] }
  0x2b   :  { %v368_v35 = vld [vmem:[%s921_s0 + $0x318] ss:$2 sm:$0xff]  ;;  %326 = vst.msk [vmem:[%s922_s1 + $0xf0] sm:$0xff] %vm295_vm0, %v289_v33  ;;  %v185_v44 = vmax.f32 %v369_v40, %v405_v41  ;;  %v370_v45 = vld [vmem:[%s921_s0 + $0x348] ss:$2 sm:$0xff]  ;;  %327 = vst.msk [vmem:[%s922_s1 + $0xf8] sm:$0xff] %vm295_vm0, %v290_v38 }
  0x2c   :  { %v440_v37 = vld [vmem:[%s921_s0 + $0x31a] ss:$2 sm:$0xff]  ;;  %v184_v39 = vmax.f32 %v368_v35, %v404_v36  ;;  %v291_v43 = vmax.f32 %v183_v34, %v439_v32  ;;  %v406_v46 = vld [vmem:[%s921_s0 + $0x349] ss:$2 sm:$0xff]  ;;  %v442_v47 = vld [vmem:[%s921_s0 + $0x34a] ss:$2 sm:$0xff] }
  0x2d   :  { %v186_v49 = vmax.f32 %v370_v45, %v406_v46  ;;  %v293_v50 = vmax.f32 %v185_v44, %v441_v42 }
  0x2e   :  { %v292_v48 = vmax.f32 %v184_v39, %v440_v37  ;;  %328 = vst.msk [vmem:[%s922_s1 + $0x100] sm:$0xff] %vm295_vm0, %v291_v43 }
  0x2f   :  { %v294_v51 = vmax.f32 %v186_v49, %v442_v47  ;;  %330 = vst.msk [vmem:[%s922_s1 + $0x110] sm:$0xff] %vm295_vm0, %v293_v50 }
  0x30   :  { %329 = vst.msk [vmem:[%s922_s1 + $0x108] sm:$0xff] %vm295_vm0, %v292_v48 }
  0x31   :  { %331 = vst.msk [vmem:[%s922_s1 + $0x118] sm:$0xff] %vm295_vm0, %v294_v51 }

// kernel: visual_model_forward.8
= control target key start
LH: loop header
LB: loop body
LE: loop exit
PB: predicated region body
PF: predicated region fallthrough
CT: control target
= control target key end

     0   :  { %s959_s12 = smov 0   ;;  %s1134_s0 = inlined_call_operand.vmem [shape: bf16[512,160], index: 0, kind: input, shape index: {}]   ;;  %s1135_s1 = inlined_call_operand.vmem [shape: bf16[160,128], index: 1, kind: input, shape index: {}]   ;;  %s1136_s2 = inlined_call_operand.vmem [shape: f32[1,128], index: 2, kind: input, shape index: {}]   ;;  %s1137_s3 = inlined_call_operand.vmem [shape: f32[512,128], index: 3, kind: output, shape index: {}]  }
   0x1 LB: > { %s771_s13 = sadd.s32 4294967295, %s936_s12   ;;  %p775_p0 = scmp.ge.s32.totalorder %s936_s12, 1  ;;  %s936_s12 = sphi %s959_s12, %s13_s12  }
   0x2   : > { %p139_p1 = scmp.lt.s32.totalorder %s936_s12, 3 }
   0x4   : > { %p140_p2 = pnand %p775_p0, %p139_p1 }
   0x5   : > { %v872_v0 = vld [vmem:[%s1135_s1] sm:$0xff] (!%p140_p2)   ;;  %v938_v1 = vmov (!%p140_p2), 0   ;;  %s776_s16 = sshll.u32 (!%p140_p2), %s771_s13, 5  ;;  %v873_v2 = vld [vmem:[%s1135_s1 + $0x8] sm:$0xff] (!%p140_p2)   ;;  %v874_v3 = vld [vmem:[%s1135_s1 + $0x10] sm:$0xff] (!%p140_p2)   ;;  %vm441_vm0 = vcmask (!%p140_p2), 261120  }
   0x6   : > { %143 = sbr.rel (%p140_p2) target bundleno = 321 (0x141), region = 32  ;;  %490 = vmatprep.subr.bf16.mxu0 (!%p140_p2), %v938_v1  ;;  %843 = vmatprep.subr.bf16.mxu1 (!%p140_p2), %v938_v1  ;;  %p165_p3 = scmp.lt.s32.totalorder (!%p140_p2), %s776_s16, 63  ;;  %v875_v4 = vld [vmem:[%s1135_s1 + $0x18] sm:$0xff] (!%p140_p2)   ;;  %v876_v7 = vld [vmem:[%s1135_s1 + $0x20] sm:$0xff] (!%p140_p2)   ;;  %v877_v8 = vld [vmem:[%s1135_s1 + $0x28] sm:$0xff] (!%p140_p2)  }
   0x7   : > { %491 = vmatpush1.bf16.msra.mxu0 (!%p140_p2), %v872_v0  ;;  %853 = vmatpush1.bf16.msra.mxu1 (!%p140_p2), %v872_v0  ;;  %v878_v9 = vld [vmem:[%s1135_s1 + $0x30] sm:$0xff] (!%p140_p2)   ;;  %v879_v10 = vld [vmem:[%s1135_s1 + $0x38] sm:$0xff] (!%p140_p2)   ;;  %v880_v11 = vld [vmem:[%s1135_s1 + $0x40] sm:$0xff] (!%p140_p2)  }
   0x8   : > { %492 = vmatprep.subr.bf16.mxu0 (!%p140_p2), %v938_v1  ;;  %844 = vmatprep.subr.bf16.mxu1 (!%p140_p2), %v938_v1  ;;  %v881_v12 = vld [vmem:[%s1135_s1 + $0x48] sm:$0xff] (!%p140_p2)   ;;  %v1058_v43 = vld [vmem:[%s1136_s2] ss:$0 sm:$0xff] (!%p140_p2) }
   0xb   : > { %493 = vmatpush1.bf16.msra.mxu0 (!%p140_p2), %v873_v2  ;;  %854 = vmatpush1.bf16.msra.mxu1 (!%p140_p2), %v873_v2 }
   0xc   : > { %494 = vmatprep.subr.bf16.mxu0 (!%p140_p2), %v938_v1  ;;  %845 = vmatprep.subr.bf16.mxu1 (!%p140_p2), %v938_v1 }
   0xd   : > { %s1139_s16 = smov (!%p165_p3, %s776_s16), 63 }
   0xe   : > { %s842_s21 = sshll.u32 %s1139_s16, 3 }
   0xf   : > { %s984_s24 = scalar_lea.vmem %s1134_s0, %s842_s21  ;;  %495 = vmatpush1.bf16.msra.mxu0 %v874_v3  ;;  %855 = vmatpush1.bf16.msra.mxu1 %v874_v3  ;;  %s1067_s18 = scalar_lea.vmem %s1137_s3, %s842_s21 }
  0x10   : > { %496 = vmatprep.subr.bf16.mxu0 %v938_v1  ;;  %846 = vmatprep.subr.bf16.mxu1 %v938_v1  ;;  %v884_v5 = vld [vmem:[%s984_s24 + $0x4] ss:$8 sps:$4 sm:$0xff]   ;;  %v882_v13 = vld [vmem:[%s984_s24] ss:$8 sps:$4 sm:$0xff]   ;;  %v888_v15 = vld [vmem:[%s984_s24 + $0x14] ss:$8 sps:$4 sm:$0xff]  }
  0x11   : > { %v887_v6 = vld [vmem:[%s984_s24 + $0x84] ss:$8 sps:$4 sm:$0xff]   ;;  %824 = vmatprep.mubr.msk.bf16.mxu0 %vm441_vm0, %v884_v5  ;;  %v885_v14 = vld [vmem:[%s984_s24 + $0x80] ss:$8 sps:$4 sm:$0xff]   ;;  %v890_v16 = vld [vmem:[%s984_s24 + $0x94] ss:$8 sps:$4 sm:$0xff]  }
  0x12   : > { %832 = vmatprep.mubr.msk.bf16.mxu1 %vm441_vm0, %v887_v6  ;;  %v892_v17 = vld [vmem:[%s984_s24 + $0x10] ss:$8 sps:$4 sm:$0xff]   ;;  %v894_v19 = vld [vmem:[%s984_s24 + $0x24] ss:$8 sps:$4 sm:$0xff]   ;;  %v898_v21 = vld [vmem:[%s984_s24 + $0x20] ss:$8 sps:$4 sm:$0xff]  }
  0x13   : > { %497 = vmatpush1.bf16.msra.mxu0 %v875_v4  ;;  %856 = vmatpush1.bf16.msra.mxu1 %v875_v4  ;;  %v893_v18 = vld [vmem:[%s984_s24 + $0x90] ss:$8 sps:$4 sm:$0xff]   ;;  %v896_v20 = vld [vmem:[%s984_s24 + $0xa4] ss:$8 sps:$4 sm:$0xff]   ;;  %v899_v22 = vld [vmem:[%s984_s24 + $0xa0] ss:$8 sps:$4 sm:$0xff]  }
  0x14   : > { %498 = vmatprep.subr.bf16.mxu0 %v938_v1  ;;  %847 = vmatprep.subr.bf16.mxu1 %v938_v1  ;;  %v900_v23 = vld [vmem:[%s984_s24 + $0x34] ss:$8 sps:$4 sm:$0xff]   ;;  %v904_v25 = vld [vmem:[%s984_s24 + $0x30] ss:$8 sps:$4 sm:$0xff]   ;;  %v906_v27 = vld [vmem:[%s984_s24 + $0x44] ss:$8 sps:$4 sm:$0xff]  }
  0x15   : > { %v902_v24 = vld [vmem:[%s984_s24 + $0xb4] ss:$8 sps:$4 sm:$0xff]   ;;  %v905_v26 = vld [vmem:[%s984_s24 + $0xb0] ss:$8 sps:$4 sm:$0xff]   ;;  %v908_v28 = vld [vmem:[%s984_s24 + $0xc4] ss:$8 sps:$4 sm:$0xff]  }
  0x16   : > { %v910_v29 = vld [vmem:[%s984_s24 + $0x40] ss:$8 sps:$4 sm:$0xff]   ;;  %v912_v31 = vld [vmem:[%s984_s24 + $0x54] ss:$8 sps:$4 sm:$0xff]   ;;  %v916_v33 = vld [vmem:[%s984_s24 + $0x50] ss:$8 sps:$4 sm:$0xff]  }
  0x17   : > { %499 = vmatpush1.bf16.msra.mxu0 %v876_v7  ;;  %857 = vmatpush1.bf16.msra.mxu1 %v876_v7  ;;  %v911_v30 = vld [vmem:[%s984_s24 + $0xc0] ss:$8 sps:$4 sm:$0xff]   ;;  %v914_v32 = vld [vmem:[%s984_s24 + $0xd4] ss:$8 sps:$4 sm:$0xff]   ;;  %v917_v34 = vld [vmem:[%s984_s24 + $0xd0] ss:$8 sps:$4 sm:$0xff]  }
  0x18   : > { %500 = vmatprep.subr.bf16.mxu0 %v938_v1  ;;  %848 = vmatprep.subr.bf16.mxu1 %v938_v1  ;;  %v918_v35 = vld [vmem:[%s984_s24 + $0x64] ss:$8 sps:$4 sm:$0xff]   ;;  %v922_v37 = vld [vmem:[%s984_s24 + $0x60] ss:$8 sps:$4 sm:$0xff]   ;;  %v924_v39 = vld [vmem:[%s984_s24 + $0x74] ss:$8 sps:$4 sm:$0xff]  }
  0x19   : > { %v920_v36 = vld [vmem:[%s984_s24 + $0xe4] ss:$8 sps:$4 sm:$0xff]   ;;  %v923_v38 = vld [vmem:[%s984_s24 + $0xe0] ss:$8 sps:$4 sm:$0xff]   ;;  %v926_v40 = vld [vmem:[%s984_s24 + $0xf4] ss:$8 sps:$4 sm:$0xff]  }
  0x1a   : > { %v928_v41 = vld [vmem:[%s984_s24 + $0x70] ss:$8 sps:$4 sm:$0xff]  }
  0x1b   : > { %501 = vmatpush1.bf16.msra.mxu0 %v877_v8  ;;  %858 = vmatpush1.bf16.msra.mxu1 %v877_v8  ;;  %v929_v42 = vld [vmem:[%s984_s24 + $0xf0] ss:$8 sps:$4 sm:$0xff]  }
  0x1c   : > { %502 = vmatprep.subr.bf16.mxu0 %v938_v1  ;;  %849 = vmatprep.subr.bf16.mxu1 %v938_v1 }
  0x1f   : > { %503 = vmatpush1.bf16.msra.mxu0 %v878_v9  ;;  %859 = vmatpush1.bf16.msra.mxu1 %v878_v9 }
  0x20   : > { %504 = vmatprep.subr.bf16.mxu0 %v938_v1  ;;  %850 = vmatprep.subr.bf16.mxu1 %v938_v1 }
  0x23   : > { %505 = vmatpush1.bf16.msra.mxu0 %v879_v10  ;;  %860 = vmatpush1.bf16.msra.mxu1 %v879_v10 }
  0x24   : > { %506 = vmatprep.subr.bf16.mxu0 %v938_v1  ;;  %851 = vmatprep.subr.bf16.mxu1 %v938_v1 }
  0x27   : > { %507 = vmatpush1.bf16.msra.mxu0 %v880_v11  ;;  %861 = vmatpush1.bf16.msra.mxu1 %v880_v11 }
  0x28   : > { %508 = vmatprep.subr.bf16.mxu0 %v938_v1  ;;  %852 = vmatprep.subr.bf16.mxu1 %v938_v1 }
  0x2b   : > { %509 = vmatpush1.bf16.msra.mxu0 %v881_v12  ;;  %862 = vmatpush1.bf16.msra.mxu1 %v881_v12 }
  0x2e   : > { %523 = vmatmul.mubr.bf16.vlgmr.msra.gmra.mrb[0].mxu0 %v882_v13  ;;  %587 = vmatmul.mubr.bf16.vlgmr.msra.gmra.mrb[0].mxu1 %v885_v14 }
  0x2f   : > { %825 = vmatprep.mubr.msk.bf16.mxu0 %vm441_vm0, %v888_v15  ;;  %833 = vmatprep.mubr.msk.bf16.mxu1 %vm441_vm0, %v890_v16 }
  0x36   : > { %531 = vmatmul.mubr.bf16.gmra.mrb[4].mxu0 %v892_v17  ;;  %595 = vmatmul.mubr.bf16.gmra.mrb[4].mxu1 %v893_v18 }
  0x37   : > { %826 = vmatprep.mubr.msk.bf16.mxu0 %vm441_vm0, %v894_v19  ;;  %834 = vmatprep.mubr.msk.bf16.mxu1 %vm441_vm0, %v896_v20 }
  0x3e   : > { %539 = vmatmul.mubr.bf16.gmra.mrb[8].mxu0 %v898_v21  ;;  %603 = vmatmul.mubr.bf16.gmra.mrb[8].mxu1 %v899_v22 }
  0x3f   : > { %827 = vmatprep.mubr.msk.bf16.mxu0 %vm441_vm0, %v900_v23  ;;  %835 = vmatprep.mubr.msk.bf16.mxu1 %vm441_vm0, %v902_v24 }
  0x46   : > { %547 = vmatmul.mubr.bf16.gmra.mrb[12].mxu0 %v904_v25  ;;  %611 = vmatmul.mubr.bf16.gmra.mrb[12].mxu1 %v905_v26 }
  0x47   : > { %828 = vmatprep.mubr.msk.bf16.mxu0 %vm441_vm0, %v906_v27  ;;  %836 = vmatprep.mubr.msk.bf16.mxu1 %vm441_vm0, %v908_v28 }
  0x4e   : > { %555 = vmatmul.mubr.bf16.gmra.mrb[16].mxu0 %v910_v29  ;;  %619 = vmatmul.mubr.bf16.gmra.mrb[16].mxu1 %v911_v30 }
  0x4f   : > { %829 = vmatprep.mubr.msk.bf16.mxu0 %vm441_vm0, %v912_v31  ;;  %837 = vmatprep.mubr.msk.bf16.mxu1 %vm441_vm0, %v914_v32 }
  0x56   : > { %563 = vmatmul.mubr.bf16.gmra.mrb[20].mxu0 %v916_v33  ;;  %627 = vmatmul.mubr.bf16.gmra.mrb[20].mxu1 %v917_v34 }
  0x57   : > { %830 = vmatprep.mubr.msk.bf16.mxu0 %vm441_vm0, %v918_v35  ;;  %838 = vmatprep.mubr.msk.bf16.mxu1 %vm441_vm0, %v920_v36 }
  0x5e   : > { %571 = vmatmul.mubr.bf16.gmra.mrb[24].mxu0 %v922_v37  ;;  %635 = vmatmul.mubr.bf16.gmra.mrb[24].mxu1 %v923_v38 }
  0x5f   : > { %831 = vmatprep.mubr.msk.bf16.mxu0 %vm441_vm0, %v924_v39  ;;  %839 = vmatprep.mubr.msk.bf16.mxu1 %vm441_vm0, %v926_v40 }
  0x66   : > { %579 = vmatmul.mubr.bf16.gmra.mrb[28].mxu0 %v928_v41  ;;  %643 = vmatmul.mubr.bf16.gmra.mrb[28].mxu1 %v929_v42 }
 0x101   : > { %v524_v44 = vpop.f32.mrb[0].mxu0  ;;  %v588_v45 = vpop.f32.mrb[0].mxu1 }
 0x102   : > { %v525_v46 = vadd.f32 %v1058_v43, %v524_v44  ;;  %v589_v47 = vadd.f32 %v1058_v43, %v588_v45  ;;  %v526_v48 = vpop.f32.mrb[1].mxu0  ;;  %v590_v49 = vpop.f32.mrb[1].mxu1 }
 0x103   : > { %v527_v50 = vpop.f32.mrb[2].mxu0  ;;  %v591_v51 = vpop.f32.mrb[2].mxu1 }
 0x104   : > { %v651_v52 = vmax.f32 %v525_v46, 0.0  ;;  %v667_v53 = vmax.f32 %v589_v47, 0.0  ;;  %v528_v54 = vadd.f32 %v1058_v43, %v527_v50  ;;  %v592_v55 = vadd.f32 %v1058_v43, %v591_v51  ;;  %v529_v56 = vpop.f32.mrb[3].mxu0  ;;  %v593_v57 = vpop.f32.mrb[3].mxu1 }
 0x106   : > { %683 = vst [vmem:[%s1067_s18] sm:$0xff] %v651_v52  ;;  %699 = vst [vmem:[%s1067_s18 + $0x80] sm:$0xff] %v667_v53  ;;  %v652_v58 = vmax.f32 %v528_v54, 0.0  ;;  %v668_v59 = vmax.f32 %v592_v55, 0.0 }
 0x108   : > { %684 = vst [vmem:[%s1067_s18 + $0x8] sm:$0xff] %v652_v58  ;;  %700 = vst [vmem:[%s1067_s18 + $0x88] sm:$0xff] %v668_v59 }
 0x109   : > { %v532_v60 = vpop.f32.mrb[4].mxu0  ;;  %v596_v61 = vpop.f32.mrb[4].mxu1 }
 0x10a   : > { %v533_v62 = vadd.f32 %v1058_v43, %v532_v60  ;;  %v597_v63 = vadd.f32 %v1058_v43, %v596_v61  ;;  %v534_v0 = vpop.f32.mrb[5].mxu0  ;;  %v598_v1 = vpop.f32.mrb[5].mxu1 }
 0x10b   : > { %v535_v2 = vpop.f32.mrb[6].mxu0  ;;  %v599_v3 = vpop.f32.mrb[6].mxu1 }
 0x10c   : > { %v653_v4 = vmax.f32 %v533_v62, 0.0  ;;  %v669_v5 = vmax.f32 %v597_v63, 0.0  ;;  %v536_v6 = vadd.f32 %v1058_v43, %v535_v2  ;;  %v600_v7 = vadd.f32 %v1058_v43, %v599_v3  ;;  %v537_v8 = vpop.f32.mrb[7].mxu0  ;;  %v601_v9 = vpop.f32.mrb[7].mxu1 }
 0x10e   : > { %685 = vst [vmem:[%s1067_s18 + $0x10] sm:$0xff] %v653_v4  ;;  %701 = vst [vmem:[%s1067_s18 + $0x90] sm:$0xff] %v669_v5  ;;  %v654_v10 = vmax.f32 %v536_v6, 0.0  ;;  %v670_v11 = vmax.f32 %v600_v7, 0.0 }
 0x110   : > { %686 = vst [vmem:[%s1067_s18 + $0x18] sm:$0xff] %v654_v10  ;;  %702 = vst [vmem:[%s1067_s18 + $0x98] sm:$0xff] %v670_v11 }
 0x111   : > { %v540_v12 = vpop.f32.mrb[8].mxu0  ;;  %v604_v13 = vpop.f32.mrb[8].mxu1 }
 0x112   : > { %v541_v14 = vadd.f32 %v1058_v43, %v540_v12  ;;  %v605_v15 = vadd.f32 %v1058_v43, %v604_v13  ;;  %v542_v16 = vpop.f32.mrb[9].mxu0  ;;  %v606_v17 = vpop.f32.mrb[9].mxu1 }
 0x113   : > { %v543_v18 = vpop.f32.mrb[10].mxu0  ;;  %v607_v19 = vpop.f32.mrb[10].mxu1 }
 0x114   : > { %v655_v20 = vmax.f32 %v541_v14, 0.0  ;;  %v671_v21 = vmax.f32 %v605_v15, 0.0  ;;  %v544_v22 = vadd.f32 %v1058_v43, %v543_v18  ;;  %v608_v23 = vadd.f32 %v1058_v43, %v607_v19  ;;  %v545_v24 = vpop.f32.mrb[11].mxu0  ;;  %v609_v25 = vpop.f32.mrb[11].mxu1 }
 0x116   : > { %687 = vst [vmem:[%s1067_s18 + $0x20] sm:$0xff] %v655_v20  ;;  %703 = vst [vmem:[%s1067_s18 + $0xa0] sm:$0xff] %v671_v21  ;;  %v656_v26 = vmax.f32 %v544_v22, 0.0  ;;  %v672_v27 = vmax.f32 %v608_v23, 0.0 }
 0x118   : > { %688 = vst [vmem:[%s1067_s18 + $0x28] sm:$0xff] %v656_v26  ;;  %704 = vst [vmem:[%s1067_s18 + $0xa8] sm:$0xff] %v672_v27 }
 0x119   : > { %v548_v28 = vpop.f32.mrb[12].mxu0  ;;  %v612_v29 = vpop.f32.mrb[12].mxu1 }
 0x11a   : > { %v549_v30 = vadd.f32 %v1058_v43, %v548_v28  ;;  %v613_v31 = vadd.f32 %v1058_v43, %v612_v29  ;;  %v550_v32 = vpop.f32.mrb[13].mxu0  ;;  %v614_v33 = vpop.f32.mrb[13].mxu1 }
 0x11b   : > { %v551_v34 = vpop.f32.mrb[14].mxu0  ;;  %v615_v35 = vpop.f32.mrb[14].mxu1 }
 0x11c   : > { %v657_v36 = vmax.f32 %v549_v30, 0.0  ;;  %v673_v37 = vmax.f32 %v613_v31, 0.0  ;;  %v552_v38 = vadd.f32 %v1058_v43, %v551_v34  ;;  %v616_v39 = vadd.f32 %v1058_v43, %v615_v35  ;;  %v553_v40 = vpop.f32.mrb[15].mxu0  ;;  %v617_v41 = vpop.f32.mrb[15].mxu1 }
 0x11e   : > { %689 = vst [vmem:[%s1067_s18 + $0x30] sm:$0xff] %v657_v36  ;;  %705 = vst [vmem:[%s1067_s18 + $0xb0] sm:$0xff] %v673_v37  ;;  %v658_v42 = vmax.f32 %v552_v38, 0.0  ;;  %v674_v44 = vmax.f32 %v616_v39, 0.0 }
 0x120   : > { %690 = vst [vmem:[%s1067_s18 + $0x38] sm:$0xff] %v658_v42  ;;  %706 = vst [vmem:[%s1067_s18 + $0xb8] sm:$0xff] %v674_v44 }
 0x121   : > { %v556_v45 = vpop.f32.mrb[16].mxu0  ;;  %v620_v46 = vpop.f32.mrb[16].mxu1 }
 0x122   : > { %v557_v47 = vadd.f32 %v1058_v43, %v556_v45  ;;  %v621_v48 = vadd.f32 %v1058_v43, %v620_v46  ;;  %v558_v49 = vpop.f32.mrb[17].mxu0  ;;  %v622_v50 = vpop.f32.mrb[17].mxu1 }
 0x123   : > { %v559_v51 = vpop.f32.mrb[18].mxu0  ;;  %v623_v52 = vpop.f32.mrb[18].mxu1 }
 0x124   : > { %v659_v53 = vmax.f32 %v557_v47, 0.0  ;;  %v675_v54 = vmax.f32 %v621_v48, 0.0  ;;  %v560_v55 = vadd.f32 %v1058_v43, %v559_v51  ;;  %v624_v56 = vadd.f32 %v1058_v43, %v623_v52  ;;  %v561_v57 = vpop.f32.mrb[19].mxu0  ;;  %v625_v58 = vpop.f32.mrb[19].mxu1 }
 0x126   : > { %691 = vst [vmem:[%s1067_s18 + $0x40] sm:$0xff] %v659_v53  ;;  %707 = vst [vmem:[%s1067_s18 + $0xc0] sm:$0xff] %v675_v54  ;;  %v660_v59 = vmax.f32 %v560_v55, 0.0  ;;  %v676_v60 = vmax.f32 %v624_v56, 0.0 }
 0x128   : > { %692 = vst [vmem:[%s1067_s18 + $0x48] sm:$0xff] %v660_v59  ;;  %708 = vst [vmem:[%s1067_s18 + $0xc8] sm:$0xff] %v676_v60 }
 0x129   : > { %v564_v61 = vpop.f32.mrb[20].mxu0  ;;  %v628_v62 = vpop.f32.mrb[20].mxu1 }
 0x12a   : > { %v565_v63 = vadd.f32 %v1058_v43, %v564_v61  ;;  %v629_v0 = vadd.f32 %v1058_v43, %v628_v62  ;;  %v566_v1 = vpop.f32.mrb[21].mxu0  ;;  %v630_v2 = vpop.f32.mrb[21].mxu1 }
 0x12b   : > { %v567_v3 = vpop.f32.mrb[22].mxu0  ;;  %v631_v4 = vpop.f32.mrb[22].mxu1 }
 0x12c   : > { %v661_v5 = vmax.f32 %v565_v63, 0.0  ;;  %v677_v6 = vmax.f32 %v629_v0, 0.0  ;;  %v568_v7 = vadd.f32 %v1058_v43, %v567_v3  ;;  %v632_v8 = vadd.f32 %v1058_v43, %v631_v4  ;;  %v569_v9 = vpop.f32.mrb[23].mxu0  ;;  %v633_v10 = vpop.f32.mrb[23].mxu1 }
 0x12e   : > { %693 = vst [vmem:[%s1067_s18 + $0x50] sm:$0xff] %v661_v5  ;;  %709 = vst [vmem:[%s1067_s18 + $0xd0] sm:$0xff] %v677_v6  ;;  %v662_v11 = vmax.f32 %v568_v7, 0.0  ;;  %v678_v12 = vmax.f32 %v632_v8, 0.0 }
 0x130   : > { %694 = vst [vmem:[%s1067_s18 + $0x58] sm:$0xff] %v662_v11  ;;  %710 = vst [vmem:[%s1067_s18 + $0xd8] sm:$0xff] %v678_v12 }
 0x131   : > { %v572_v13 = vpop.f32.mrb[24].mxu0  ;;  %v636_v14 = vpop.f32.mrb[24].mxu1 }
 0x132   : > { %v573_v15 = vadd.f32 %v1058_v43, %v572_v13  ;;  %v637_v16 = vadd.f32 %v1058_v43, %v636_v14  ;;  %v574_v17 = vpop.f32.mrb[25].mxu0  ;;  %v638_v18 = vpop.f32.mrb[25].mxu1 }
 0x133   : > { %v575_v19 = vpop.f32.mrb[26].mxu0  ;;  %v639_v20 = vpop.f32.mrb[26].mxu1 }
 0x134   : > { %v663_v21 = vmax.f32 %v573_v15, 0.0  ;;  %v679_v22 = vmax.f32 %v637_v16, 0.0  ;;  %v576_v23 = vadd.f32 %v1058_v43, %v575_v19  ;;  %v640_v24 = vadd.f32 %v1058_v43, %v639_v20  ;;  %v577_v25 = vpop.f32.mrb[27].mxu0  ;;  %v641_v26 = vpop.f32.mrb[27].mxu1 }
 0x136   : > { %695 = vst [vmem:[%s1067_s18 + $0x60] sm:$0xff] %v663_v21  ;;  %711 = vst [vmem:[%s1067_s18 + $0xe0] sm:$0xff] %v679_v22  ;;  %v664_v27 = vmax.f32 %v576_v23, 0.0  ;;  %v680_v28 = vmax.f32 %v640_v24, 0.0 }
 0x138   : > { %696 = vst [vmem:[%s1067_s18 + $0x68] sm:$0xff] %v664_v27  ;;  %712 = vst [vmem:[%s1067_s18 + $0xe8] sm:$0xff] %v680_v28 }
 0x139   : > { %v580_v29 = vpop.f32.mrb[28].mxu0  ;;  %v644_v30 = vpop.f32.mrb[28].mxu1 }
 0x13a   : > { %v581_v31 = vadd.f32 %v1058_v43, %v580_v29  ;;  %v645_v32 = vadd.f32 %v1058_v43, %v644_v30  ;;  %v582_v33 = vpop.f32.mrb[29].mxu0  ;;  %v646_v34 = vpop.f32.mrb[29].mxu1 }
 0x13b   : > { %v583_v35 = vpop.f32.mrb[30].mxu0  ;;  %v647_v36 = vpop.f32.mrb[30].mxu1 }
 0x13c   : > { %v665_v37 = vmax.f32 %v581_v31, 0.0  ;;  %v681_v38 = vmax.f32 %v645_v32, 0.0  ;;  %v584_v39 = vadd.f32 %v1058_v43, %v583_v35  ;;  %v648_v40 = vadd.f32 %v1058_v43, %v647_v36  ;;  %v585_v41 = vpop.f32.mrb[31].mxu0  ;;  %v649_v42 = vpop.f32.mrb[31].mxu1 }
 0x13e   : > { %697 = vst [vmem:[%s1067_s18 + $0x70] sm:$0xff] %v665_v37  ;;  %713 = vst [vmem:[%s1067_s18 + $0xf0] sm:$0xff] %v681_v38  ;;  %v666_v44 = vmax.f32 %v584_v39, 0.0  ;;  %v682_v45 = vmax.f32 %v648_v40, 0.0 }
 0x140   : > { %698 = vst [vmem:[%s1067_s18 + $0x78] sm:$0xff] %v666_v44  ;;  %714 = vst [vmem:[%s1067_s18 + $0xf8] sm:$0xff] %v682_v45 }
 0x141 PF: > { %s13_s12 = sadd.s32 1, %s936_s12  }
 0x142   : > { %p10_p4 = scmp.ge.s32.totalorder %s13_s12, 4  }
 0x144   :  { %12 = sbr.rel (!%p10_p4) target bundleno = 1 (0x1), region = 62 }

// kernel: visual_model_forward.10
= control target key start
LH: loop header
LB: loop body
LE: loop exit
PB: predicated region body
PF: predicated region fallthrough
CT: control target
= control target key end

     0   :  { %s68_s0 = inlined_call_operand.vmem [shape: f32[2,18,128], index: 0, kind: input, shape index: {}]   ;;  %s69_s1 = inlined_call_operand.vmem [shape: f32[2,8,128], index: 1, kind: output, shape index: {}]  }
   0x1   :  { %v8_v0 = vld [vmem:[%s68_s0] ss:$2 sm:$0xff]  ;;  %v30_v1 = vld [vmem:[%s68_s0 + $0x1] ss:$2 sm:$0xff] }
   0x2   :  { %v32_v2 = vld [vmem:[%s68_s0 + $0x2] ss:$2 sm:$0xff]  ;;  %v15_v3 = vmax.f32 %v8_v0, %v30_v1  ;;  %v31_v5 = vld [vmem:[%s68_s0 + $0x19] ss:$2 sm:$0xff] }
   0x3   :  { %v29_v4 = vld [vmem:[%s68_s0 + $0x18] ss:$2 sm:$0xff] }
   0x4   :  { %v33_v6 = vld [vmem:[%s68_s0 + $0x1a] ss:$2 sm:$0xff]  ;;  %v16_v7 = vmax.f32 %v29_v4, %v31_v5  ;;  %v21_v8 = vmax.f32 %v15_v3, %v32_v2 }
   0x6   :  { %v22_v9 = vmax.f32 %v16_v7, %v33_v6  ;;  %23 = vst [vmem:[%s69_s1] sm:$0xff] %v21_v8 }
   0x8   :  { %24 = vst [vmem:[%s69_s1 + $0x8] sm:$0xff] %v22_v9 }

// kernel: visual_model_forward.11
= control target key start
LH: loop header
LB: loop body
LE: loop exit
PB: predicated region body
PF: predicated region fallthrough
CT: control target
= control target key end

     0   :  { %v426_v0 = vmov 0   ;;  %vm182_vm0 = vcmask 130048   ;;  %s599_s1 = inlined_call_operand.vmem [shape: bf16[144,128], index: 1, kind: input, shape index: {}]   ;;  %s600_s0 = inlined_call_operand.vmem [shape: bf16[128,144], index: 0, kind: input, shape index: {}]   ;;  %s601_s2 = inlined_call_operand.vmem [shape: f32[1,128], index: 2, kind: input, shape index: {}]   ;;  %s602_s3 = inlined_call_operand.vmem [shape: f32[128,128], index: 3, kind: output, shape index: {}]  }
   0x1   :  { %207 = vmatprep.subr.bf16.mxu0 %v426_v0  ;;  %374 = vmatprep.subr.bf16.mxu1 %v426_v0  ;;  %v393_v1 = vld [vmem:[%s599_s1] sm:$0xff]   ;;  %v394_v2 = vld [vmem:[%s599_s1 + $0x8] sm:$0xff]   ;;  %v395_v3 = vld [vmem:[%s599_s1 + $0x10] sm:$0xff]  }
   0x2   :  { %208 = vmatpush1.bf16.msra.mxu0 %v393_v1  ;;  %383 = vmatpush1.bf16.msra.mxu1 %v393_v1  ;;  %v396_v4 = vld [vmem:[%s599_s1 + $0x18] sm:$0xff]   ;;  %v404_v5 = vld [vmem:[%s600_s0 + $0x4] ss:$8 sps:$4 sm:$0xff]   ;;  %v399_v9 = vld [vmem:[%s599_s1 + $0x30] sm:$0xff]  }
   0x3   :  { %209 = vmatprep.subr.bf16.mxu0 %v426_v0  ;;  %375 = vmatprep.subr.bf16.mxu1 %v426_v0  ;;  %v407_v6 = vld [vmem:[%s600_s0 + $0x44] ss:$8 sps:$4 sm:$0xff]   ;;  %v400_v10 = vld [vmem:[%s599_s1 + $0x38] sm:$0xff]   ;;  %v402_v12 = vld [vmem:[%s600_s0] ss:$8 sps:$4 sm:$0xff]  }
   0x4   :  { %366 = vmatprep.mubr.msk.bf16.mxu0 %vm182_vm0, %v404_v5  ;;  %370 = vmatprep.mubr.msk.bf16.mxu1 %vm182_vm0, %v407_v6  ;;  %v397_v7 = vld [vmem:[%s599_s1 + $0x20] sm:$0xff]   ;;  %v398_v8 = vld [vmem:[%s599_s1 + $0x28] sm:$0xff]   ;;  %v408_v14 = vld [vmem:[%s600_s0 + $0x14] ss:$8 sps:$4 sm:$0xff]  }
   0x5   :  { %v401_v11 = vld [vmem:[%s599_s1 + $0x40] sm:$0xff]   ;;  %v410_v15 = vld [vmem:[%s600_s0 + $0x54] ss:$8 sps:$4 sm:$0xff]   ;;  %v412_v16 = vld [vmem:[%s600_s0 + $0x10] ss:$8 sps:$4 sm:$0xff]  }
   0x6   :  { %210 = vmatpush1.bf16.msra.mxu0 %v394_v2  ;;  %384 = vmatpush1.bf16.msra.mxu1 %v394_v2  ;;  %v405_v13 = vld [vmem:[%s600_s0 + $0x40] ss:$8 sps:$4 sm:$0xff]   ;;  %v413_v17 = vld [vmem:[%s600_s0 + $0x50] ss:$8 sps:$4 sm:$0xff]   ;;  %v414_v18 = vld [vmem:[%s600_s0 + $0x24] ss:$8 sps:$4 sm:$0xff]  }
   0x7   :  { %211 = vmatprep.subr.bf16.mxu0 %v426_v0  ;;  %376 = vmatprep.subr.bf16.mxu1 %v426_v0  ;;  %v416_v19 = vld [vmem:[%s600_s0 + $0x64] ss:$8 sps:$4 sm:$0xff]   ;;  %v418_v20 = vld [vmem:[%s600_s0 + $0x20] ss:$8 sps:$4 sm:$0xff]   ;;  %v420_v22 = vld [vmem:[%s600_s0 + $0x34] ss:$8 sps:$4 sm:$0xff]  }
   0x8   :  { %v419_v21 = vld [vmem:[%s600_s0 + $0x60] ss:$8 sps:$4 sm:$0xff]   ;;  %v422_v23 = vld [vmem:[%s600_s0 + $0x74] ss:$8 sps:$4 sm:$0xff]   ;;  %v424_v24 = vld [vmem:[%s600_s0 + $0x30] ss:$8 sps:$4 sm:$0xff]  }
   0x9   :  { %v425_v25 = vld [vmem:[%s600_s0 + $0x70] ss:$8 sps:$4 sm:$0xff]   ;;  %v533_v26 = vld [vmem:[%s601_s2] ss:$0 sm:$0xff] }
   0xa   :  { %212 = vmatpush1.bf16.msra.mxu0 %v395_v3  ;;  %385 = vmatpush1.bf16.msra.mxu1 %v395_v3 }
   0xb   :  { %213 = vmatprep.subr.bf16.mxu0 %v426_v0  ;;  %377 = vmatprep.subr.bf16.mxu1 %v426_v0 }
   0xe   :  { %214 = vmatpush1.bf16.msra.mxu0 %v396_v4  ;;  %386 = vmatpush1.bf16.msra.mxu1 %v396_v4 }
   0xf   :  { %215 = vmatprep.subr.bf16.mxu0 %v426_v0  ;;  %378 = vmatprep.subr.bf16.mxu1 %v426_v0 }
  0x12   :  { %216 = vmatpush1.bf16.msra.mxu0 %v397_v7  ;;  %387 = vmatpush1.bf16.msra.mxu1 %v397_v7 }
  0x13   :  { %217 = vmatprep.subr.bf16.mxu0 %v426_v0  ;;  %379 = vmatprep.subr.bf16.mxu1 %v426_v0 }
  0x16   :  { %218 = vmatpush1.bf16.msra.mxu0 %v398_v8  ;;  %388 = vmatpush1.bf16.msra.mxu1 %v398_v8 }
  0x17   :  { %219 = vmatprep.subr.bf16.mxu0 %v426_v0  ;;  %380 = vmatprep.subr.bf16.mxu1 %v426_v0 }
  0x1a   :  { %220 = vmatpush1.bf16.msra.mxu0 %v399_v9  ;;  %389 = vmatpush1.bf16.msra.mxu1 %v399_v9 }
  0x1b   :  { %221 = vmatprep.subr.bf16.mxu0 %v426_v0  ;;  %381 = vmatprep.subr.bf16.mxu1 %v426_v0 }
  0x1e   :  { %222 = vmatpush1.bf16.msra.mxu0 %v400_v10  ;;  %390 = vmatpush1.bf16.msra.mxu1 %v400_v10 }
  0x1f   :  { %223 = vmatprep.subr.bf16.mxu0 %v426_v0  ;;  %382 = vmatprep.subr.bf16.mxu1 %v426_v0 }
  0x22   :  { %224 = vmatpush1.bf16.msra.mxu0 %v401_v11  ;;  %391 = vmatpush1.bf16.msra.mxu1 %v401_v11 }
  0x25   :  { %240 = vmatmul.mubr.bf16.vlgmr.msra.gmra.mrb[0].mxu0 %v402_v12  ;;  %272 = vmatmul.mubr.bf16.vlgmr.msra.gmra.mrb[0].mxu1 %v405_v13 }
  0x26   :  { %367 = vmatprep.mubr.msk.bf16.mxu0 %vm182_vm0, %v408_v14  ;;  %371 = vmatprep.mubr.msk.bf16.mxu1 %vm182_vm0, %v410_v15 }
  0x2d   :  { %248 = vmatmul.mubr.bf16.gmra.mrb[4].mxu0 %v412_v16  ;;  %280 = vmatmul.mubr.bf16.gmra.mrb[4].mxu1 %v413_v17 }
  0x2e   :  { %368 = vmatprep.mubr.msk.bf16.mxu0 %vm182_vm0, %v414_v18  ;;  %372 = vmatprep.mubr.msk.bf16.mxu1 %vm182_vm0, %v416_v19 }
  0x35   :  { %256 = vmatmul.mubr.bf16.gmra.mrb[8].mxu0 %v418_v20  ;;  %288 = vmatmul.mubr.bf16.gmra.mrb[8].mxu1 %v419_v21 }
  0x36   :  { %369 = vmatprep.mubr.msk.bf16.mxu0 %vm182_vm0, %v420_v22  ;;  %373 = vmatprep.mubr.msk.bf16.mxu1 %vm182_vm0, %v422_v23 }
  0x3d   :  { %264 = vmatmul.mubr.bf16.gmra.mrb[12].mxu0 %v424_v24  ;;  %296 = vmatmul.mubr.bf16.gmra.mrb[12].mxu1 %v425_v25 }
  0xf8   :  { %v241_v27 = vpop.f32.mrb[0].mxu0  ;;  %v273_v28 = vpop.f32.mrb[0].mxu1 }
  0xf9   :  { %v242_v29 = vadd.f32 %v533_v26, %v241_v27  ;;  %v274_v30 = vadd.f32 %v533_v26, %v273_v28  ;;  %v243_v31 = vpop.f32.mrb[1].mxu0  ;;  %v275_v32 = vpop.f32.mrb[1].mxu1 }
  0xfa   :  { %v244_v33 = vpop.f32.mrb[2].mxu0  ;;  %v276_v34 = vpop.f32.mrb[2].mxu1 }
  0xfb   :  { %v304_v35 = vmax.f32 %v242_v29, 0.0  ;;  %v312_v36 = vmax.f32 %v274_v30, 0.0  ;;  %v245_v37 = vadd.f32 %v533_v26, %v244_v33  ;;  %v277_v38 = vadd.f32 %v533_v26, %v276_v34  ;;  %v246_v39 = vpop.f32.mrb[3].mxu0  ;;  %v278_v40 = vpop.f32.mrb[3].mxu1 }
  0xfd   :  { %320 = vst [vmem:[%s602_s3] sm:$0xff] %v304_v35  ;;  %328 = vst [vmem:[%s602_s3 + $0x40] sm:$0xff] %v312_v36  ;;  %v305_v41 = vmax.f32 %v245_v37, 0.0  ;;  %v313_v42 = vmax.f32 %v277_v38, 0.0 }
  0xff   :  { %321 = vst [vmem:[%s602_s3 + $0x8] sm:$0xff] %v305_v41  ;;  %329 = vst [vmem:[%s602_s3 + $0x48] sm:$0xff] %v313_v42 }
 0x100   :  { %v249_v43 = vpop.f32.mrb[4].mxu0  ;;  %v281_v44 = vpop.f32.mrb[4].mxu1 }
 0x101   :  { %v250_v45 = vadd.f32 %v533_v26, %v249_v43  ;;  %v282_v46 = vadd.f32 %v533_v26, %v281_v44  ;;  %v251_v47 = vpop.f32.mrb[5].mxu0  ;;  %v283_v48 = vpop.f32.mrb[5].mxu1 }
 0x102   :  { %v252_v49 = vpop.f32.mrb[6].mxu0  ;;  %v284_v50 = vpop.f32.mrb[6].mxu1 }
 0x103   :  { %v306_v51 = vmax.f32 %v250_v45, 0.0  ;;  %v314_v52 = vmax.f32 %v282_v46, 0.0  ;;  %v253_v53 = vadd.f32 %v533_v26, %v252_v49  ;;  %v285_v54 = vadd.f32 %v533_v26, %v284_v50  ;;  %v254_v55 = vpop.f32.mrb[7].mxu0  ;;  %v286_v56 = vpop.f32.mrb[7].mxu1 }
 0x105   :  { %322 = vst [vmem:[%s602_s3 + $0x10] sm:$0xff] %v306_v51  ;;  %330 = vst [vmem:[%s602_s3 + $0x50] sm:$0xff] %v314_v52  ;;  %v307_v57 = vmax.f32 %v253_v53, 0.0  ;;  %v315_v58 = vmax.f32 %v285_v54, 0.0 }
 0x107   :  { %323 = vst [vmem:[%s602_s3 + $0x18] sm:$0xff] %v307_v57  ;;  %331 = vst [vmem:[%s602_s3 + $0x58] sm:$0xff] %v315_v58 }
 0x108   :  { %v257_v59 = vpop.f32.mrb[8].mxu0  ;;  %v289_v60 = vpop.f32.mrb[8].mxu1 }
 0x109   :  { %v258_v61 = vadd.f32 %v533_v26, %v257_v59  ;;  %v290_v62 = vadd.f32 %v533_v26, %v289_v60  ;;  %v259_v63 = vpop.f32.mrb[9].mxu0  ;;  %v291_v0 = vpop.f32.mrb[9].mxu1 }
 0x10a   :  { %v260_v1 = vpop.f32.mrb[10].mxu0  ;;  %v292_v2 = vpop.f32.mrb[10].mxu1 }
 0x10b   :  { %v308_v3 = vmax.f32 %v258_v61, 0.0  ;;  %v316_v4 = vmax.f32 %v290_v62, 0.0  ;;  %v261_v5 = vadd.f32 %v533_v26, %v260_v1  ;;  %v293_v6 = vadd.f32 %v533_v26, %v292_v2  ;;  %v262_v7 = vpop.f32.mrb[11].mxu0  ;;  %v294_v8 = vpop.f32.mrb[11].mxu1 }
 0x10d   :  { %324 = vst [vmem:[%s602_s3 + $0x20] sm:$0xff] %v308_v3  ;;  %332 = vst [vmem:[%s602_s3 + $0x60] sm:$0xff] %v316_v4  ;;  %v309_v9 = vmax.f32 %v261_v5, 0.0  ;;  %v317_v10 = vmax.f32 %v293_v6, 0.0 }
 0x10f   :  { %325 = vst [vmem:[%s602_s3 + $0x28] sm:$0xff] %v309_v9  ;;  %333 = vst [vmem:[%s602_s3 + $0x68] sm:$0xff] %v317_v10 }
 0x110   :  { %v265_v11 = vpop.f32.mrb[12].mxu0  ;;  %v297_v12 = vpop.f32.mrb[12].mxu1 }
 0x111   :  { %v266_v13 = vadd.f32 %v533_v26, %v265_v11  ;;  %v298_v14 = vadd.f32 %v533_v26, %v297_v12  ;;  %v267_v15 = vpop.f32.mrb[13].mxu0  ;;  %v299_v16 = vpop.f32.mrb[13].mxu1 }
 0x112   :  { %v268_v17 = vpop.f32.mrb[14].mxu0  ;;  %v300_v18 = vpop.f32.mrb[14].mxu1 }
 0x113   :  { %v310_v19 = vmax.f32 %v266_v13, 0.0  ;;  %v318_v20 = vmax.f32 %v298_v14, 0.0  ;;  %v269_v21 = vadd.f32 %v533_v26, %v268_v17  ;;  %v301_v22 = vadd.f32 %v533_v26, %v300_v18  ;;  %v270_v23 = vpop.f32.mrb[15].mxu0  ;;  %v302_v24 = vpop.f32.mrb[15].mxu1 }
 0x115   :  { %326 = vst [vmem:[%s602_s3 + $0x30] sm:$0xff] %v310_v19  ;;  %334 = vst [vmem:[%s602_s3 + $0x70] sm:$0xff] %v318_v20  ;;  %v311_v25 = vmax.f32 %v269_v21, 0.0  ;;  %v319_v27 = vmax.f32 %v301_v22, 0.0 }
 0x117   :  { %327 = vst [vmem:[%s602_s3 + $0x38] sm:$0xff] %v311_v25  ;;  %335 = vst [vmem:[%s602_s3 + $0x78] sm:$0xff] %v319_v27 }

// kernel: visual_model_forward.12
= control target key start
LH: loop header
LB: loop body
LE: loop exit
PB: predicated region body
PF: predicated region fallthrough
CT: control target
= control target key end

     0   :  { %v461_v0 = vmov 0   ;;  %vm185_vm0 = vcmask 130048   ;;  %s687_s1 = inlined_call_operand.vmem [shape: bf16[144,128], index: 1, kind: input, shape index: {}]   ;;  %s688_s0 = inlined_call_operand.vmem [shape: bf16[128,144], index: 0, kind: input, shape index: {}]   ;;  %s689_s2 = inlined_call_operand.vmem [shape: f32[1,128], index: 2, kind: input, shape index: {}]   ;;  %s690_s3 = inlined_call_operand.vmem [shape: f32[128,128], index: 3, kind: input, shape index: {}]   ;;  %s691_s4 = inlined_call_operand.vmem [shape: f32[128,128], index: 4, kind: output, shape index: {}]  }
   0x1   :  { %210 = vmatprep.subr.bf16.mxu0 %v461_v0  ;;  %409 = vmatprep.subr.bf16.mxu1 %v461_v0  ;;  %v428_v1 = vld [vmem:[%s687_s1] sm:$0xff]   ;;  %v429_v2 = vld [vmem:[%s687_s1 + $0x8] sm:$0xff]   ;;  %v430_v3 = vld [vmem:[%s687_s1 + $0x10] sm:$0xff]  }
   0x2   :  { %211 = vmatpush1.bf16.msra.mxu0 %v428_v1  ;;  %418 = vmatpush1.bf16.msra.mxu1 %v428_v1  ;;  %v431_v4 = vld [vmem:[%s687_s1 + $0x18] sm:$0xff]   ;;  %v439_v5 = vld [vmem:[%s688_s0 + $0x4] ss:$8 sps:$4 sm:$0xff]   ;;  %v434_v9 = vld [vmem:[%s687_s1 + $0x30] sm:$0xff]  }
   0x3   :  { %212 = vmatprep.subr.bf16.mxu0 %v461_v0  ;;  %410 = vmatprep.subr.bf16.mxu1 %v461_v0  ;;  %v442_v6 = vld [vmem:[%s688_s0 + $0x44] ss:$8 sps:$4 sm:$0xff]   ;;  %v435_v10 = vld [vmem:[%s687_s1 + $0x38] sm:$0xff]   ;;  %v437_v12 = vld [vmem:[%s688_s0] ss:$8 sps:$4 sm:$0xff]  }
   0x4   :  { %401 = vmatprep.mubr.msk.bf16.mxu0 %vm185_vm0, %v439_v5  ;;  %405 = vmatprep.mubr.msk.bf16.mxu1 %vm185_vm0, %v442_v6  ;;  %v432_v7 = vld [vmem:[%s687_s1 + $0x20] sm:$0xff]   ;;  %v433_v8 = vld [vmem:[%s687_s1 + $0x28] sm:$0xff]   ;;  %v443_v14 = vld [vmem:[%s688_s0 + $0x14] ss:$8 sps:$4 sm:$0xff]  }
   0x5   :  { %v436_v11 = vld [vmem:[%s687_s1 + $0x40] sm:$0xff]   ;;  %v445_v15 = vld [vmem:[%s688_s0 + $0x54] ss:$8 sps:$4 sm:$0xff]   ;;  %v447_v16 = vld [vmem:[%s688_s0 + $0x10] ss:$8 sps:$4 sm:$0xff]  }
   0x6   :  { %213 = vmatpush1.bf16.msra.mxu0 %v429_v2  ;;  %419 = vmatpush1.bf16.msra.mxu1 %v429_v2  ;;  %v440_v13 = vld [vmem:[%s688_s0 + $0x40] ss:$8 sps:$4 sm:$0xff]   ;;  %v448_v17 = vld [vmem:[%s688_s0 + $0x50] ss:$8 sps:$4 sm:$0xff]   ;;  %v449_v18 = vld [vmem:[%s688_s0 + $0x24] ss:$8 sps:$4 sm:$0xff]  }
   0x7   :  { %214 = vmatprep.subr.bf16.mxu0 %v461_v0  ;;  %411 = vmatprep.subr.bf16.mxu1 %v461_v0  ;;  %v451_v19 = vld [vmem:[%s688_s0 + $0x64] ss:$8 sps:$4 sm:$0xff]   ;;  %v453_v20 = vld [vmem:[%s688_s0 + $0x20] ss:$8 sps:$4 sm:$0xff]   ;;  %v455_v22 = vld [vmem:[%s688_s0 + $0x34] ss:$8 sps:$4 sm:$0xff]  }
   0x8   :  { %v454_v21 = vld [vmem:[%s688_s0 + $0x60] ss:$8 sps:$4 sm:$0xff]   ;;  %v457_v23 = vld [vmem:[%s688_s0 + $0x74] ss:$8 sps:$4 sm:$0xff]   ;;  %v459_v24 = vld [vmem:[%s688_s0 + $0x30] ss:$8 sps:$4 sm:$0xff]  }
   0x9   :  { %v460_v25 = vld [vmem:[%s688_s0 + $0x70] ss:$8 sps:$4 sm:$0xff]   ;;  %v573_v26 = vld [vmem:[%s689_s2] ss:$0 sm:$0xff]  ;;  %v308_v36 = vld [vmem:[%s690_s3 + $0x8] sm:$0xff] }
   0xa   :  { %215 = vmatpush1.bf16.msra.mxu0 %v430_v3  ;;  %420 = vmatpush1.bf16.msra.mxu1 %v430_v3  ;;  %v307_v28 = vld [vmem:[%s690_s3] sm:$0xff]  ;;  %v316_v38 = vld [vmem:[%s690_s3 + $0x48] sm:$0xff]  ;;  %v309_v52 = vld [vmem:[%s690_s3 + $0x10] sm:$0xff] }
   0xb   :  { %216 = vmatprep.subr.bf16.mxu0 %v461_v0  ;;  %412 = vmatprep.subr.bf16.mxu1 %v461_v0  ;;  %v315_v30 = vld [vmem:[%s690_s3 + $0x40] sm:$0xff]  ;;  %v317_v54 = vld [vmem:[%s690_s3 + $0x50] sm:$0xff]  ;;  %v310_v60 = vld [vmem:[%s690_s3 + $0x18] sm:$0xff] }
   0xc   :  { %v318_v62 = vld [vmem:[%s690_s3 + $0x58] sm:$0xff] }
   0xe   :  { %217 = vmatpush1.bf16.msra.mxu0 %v431_v4  ;;  %421 = vmatpush1.bf16.msra.mxu1 %v431_v4 }
   0xf   :  { %218 = vmatprep.subr.bf16.mxu0 %v461_v0  ;;  %413 = vmatprep.subr.bf16.mxu1 %v461_v0 }
  0x12   :  { %219 = vmatpush1.bf16.msra.mxu0 %v432_v7  ;;  %422 = vmatpush1.bf16.msra.mxu1 %v432_v7 }
  0x13   :  { %220 = vmatprep.subr.bf16.mxu0 %v461_v0  ;;  %414 = vmatprep.subr.bf16.mxu1 %v461_v0 }
  0x16   :  { %221 = vmatpush1.bf16.msra.mxu0 %v433_v8  ;;  %423 = vmatpush1.bf16.msra.mxu1 %v433_v8 }
  0x17   :  { %222 = vmatprep.subr.bf16.mxu0 %v461_v0  ;;  %415 = vmatprep.subr.bf16.mxu1 %v461_v0 }
  0x1a   :  { %223 = vmatpush1.bf16.msra.mxu0 %v434_v9  ;;  %424 = vmatpush1.bf16.msra.mxu1 %v434_v9 }
  0x1b   :  { %224 = vmatprep.subr.bf16.mxu0 %v461_v0  ;;  %416 = vmatprep.subr.bf16.mxu1 %v461_v0 }
  0x1e   :  { %225 = vmatpush1.bf16.msra.mxu0 %v435_v10  ;;  %425 = vmatpush1.bf16.msra.mxu1 %v435_v10 }
  0x1f   :  { %226 = vmatprep.subr.bf16.mxu0 %v461_v0  ;;  %417 = vmatprep.subr.bf16.mxu1 %v461_v0 }
  0x22   :  { %227 = vmatpush1.bf16.msra.mxu0 %v436_v11  ;;  %426 = vmatpush1.bf16.msra.mxu1 %v436_v11 }
  0x25   :  { %243 = vmatmul.mubr.bf16.vlgmr.msra.gmra.mrb[0].mxu0 %v437_v12  ;;  %275 = vmatmul.mubr.bf16.vlgmr.msra.gmra.mrb[0].mxu1 %v440_v13  ;;  %v311_v12 = vld [vmem:[%s690_s3 + $0x20] sm:$0xff] }
  0x26   :  { %402 = vmatprep.mubr.msk.bf16.mxu0 %vm185_vm0, %v443_v14  ;;  %406 = vmatprep.mubr.msk.bf16.mxu1 %vm185_vm0, %v445_v15  ;;  %v319_v14 = vld [vmem:[%s690_s3 + $0x60] sm:$0xff] }
  0x2d   :  { %251 = vmatmul.mubr.bf16.gmra.mrb[4].mxu0 %v447_v16  ;;  %283 = vmatmul.mubr.bf16.gmra.mrb[4].mxu1 %v448_v17 }
  0x2e   :  { %403 = vmatprep.mubr.msk.bf16.mxu0 %vm185_vm0, %v449_v18  ;;  %407 = vmatprep.mubr.msk.bf16.mxu1 %vm185_vm0, %v451_v19 }
  0x35   :  { %259 = vmatmul.mubr.bf16.gmra.mrb[8].mxu0 %v453_v20  ;;  %291 = vmatmul.mubr.bf16.gmra.mrb[8].mxu1 %v454_v21  ;;  %v312_v20 = vld [vmem:[%s690_s3 + $0x28] sm:$0xff] }
  0x36   :  { %404 = vmatprep.mubr.msk.bf16.mxu0 %vm185_vm0, %v455_v22  ;;  %408 = vmatprep.mubr.msk.bf16.mxu1 %vm185_vm0, %v457_v23  ;;  %v320_v22 = vld [vmem:[%s690_s3 + $0x68] sm:$0xff] }
  0x3d   :  { %267 = vmatmul.mubr.bf16.gmra.mrb[12].mxu0 %v459_v24  ;;  %299 = vmatmul.mubr.bf16.gmra.mrb[12].mxu1 %v460_v25 }
  0xf8   :  { %v244_v27 = vpop.f32.mrb[0].mxu0  ;;  %v276_v29 = vpop.f32.mrb[0].mxu1 }
  0xf9   :  { %v245_v31 = vadd.f32 %v573_v26, %v244_v27  ;;  %v277_v32 = vadd.f32 %v573_v26, %v276_v29  ;;  %v246_v33 = vpop.f32.mrb[1].mxu0  ;;  %v278_v34 = vpop.f32.mrb[1].mxu1 }
  0xfa   :  { %v247_v35 = vpop.f32.mrb[2].mxu0  ;;  %v279_v37 = vpop.f32.mrb[2].mxu1 }
  0xfb   :  { %v323_v39 = vadd.f32 %v307_v28, %v245_v31  ;;  %v331_v40 = vadd.f32 %v315_v30, %v277_v32  ;;  %v248_v41 = vadd.f32 %v573_v26, %v247_v35  ;;  %v280_v42 = vadd.f32 %v573_v26, %v279_v37  ;;  %v249_v43 = vpop.f32.mrb[3].mxu0  ;;  %v281_v44 = vpop.f32.mrb[3].mxu1  ;;  %v313_v37 = vld [vmem:[%s690_s3 + $0x30] sm:$0xff] }
  0xfd   :  { %v339_v45 = vmax.f32 %v323_v39, 0.0  ;;  %v347_v46 = vmax.f32 %v331_v40, 0.0  ;;  %v324_v47 = vadd.f32 %v308_v36, %v248_v41  ;;  %v332_v48 = vadd.f32 %v316_v38, %v280_v42  ;;  %v321_v39 = vld [vmem:[%s690_s3 + $0x70] sm:$0xff] }
  0xff   :  { %355 = vst [vmem:[%s691_s4] sm:$0xff] %v339_v45  ;;  %363 = vst [vmem:[%s691_s4 + $0x40] sm:$0xff] %v347_v46  ;;  %v340_v49 = vmax.f32 %v324_v47, 0.0  ;;  %v348_v50 = vmax.f32 %v332_v48, 0.0  ;;  %v314_v45 = vld [vmem:[%s690_s3 + $0x38] sm:$0xff] }
 0x100   :  { %v252_v51 = vpop.f32.mrb[4].mxu0  ;;  %v284_v53 = vpop.f32.mrb[4].mxu1  ;;  %v322_v47 = vld [vmem:[%s690_s3 + $0x78] sm:$0xff] }
 0x101   :  { %356 = vst [vmem:[%s691_s4 + $0x8] sm:$0xff] %v340_v49  ;;  %364 = vst [vmem:[%s691_s4 + $0x48] sm:$0xff] %v348_v50  ;;  %v253_v55 = vadd.f32 %v573_v26, %v252_v51  ;;  %v285_v56 = vadd.f32 %v573_v26, %v284_v53  ;;  %v254_v57 = vpop.f32.mrb[5].mxu0  ;;  %v286_v58 = vpop.f32.mrb[5].mxu1 }
 0x102   :  { %v255_v59 = vpop.f32.mrb[6].mxu0  ;;  %v287_v61 = vpop.f32.mrb[6].mxu1 }
 0x103   :  { %v325_v63 = vadd.f32 %v309_v52, %v253_v55  ;;  %v333_v0 = vadd.f32 %v317_v54, %v285_v56  ;;  %v256_v1 = vadd.f32 %v573_v26, %v255_v59  ;;  %v288_v2 = vadd.f32 %v573_v26, %v287_v61  ;;  %v257_v3 = vpop.f32.mrb[7].mxu0  ;;  %v289_v4 = vpop.f32.mrb[7].mxu1 }
 0x105   :  { %v341_v5 = vmax.f32 %v325_v63, 0.0  ;;  %v349_v6 = vmax.f32 %v333_v0, 0.0  ;;  %v326_v7 = vadd.f32 %v310_v60, %v256_v1  ;;  %v334_v8 = vadd.f32 %v318_v62, %v288_v2 }
 0x107   :  { %357 = vst [vmem:[%s691_s4 + $0x10] sm:$0xff] %v341_v5  ;;  %365 = vst [vmem:[%s691_s4 + $0x50] sm:$0xff] %v349_v6  ;;  %v342_v9 = vmax.f32 %v326_v7, 0.0  ;;  %v350_v10 = vmax.f32 %v334_v8, 0.0 }
 0x108   :  { %v260_v11 = vpop.f32.mrb[8].mxu0  ;;  %v292_v13 = vpop.f32.mrb[8].mxu1 }
 0x109   :  { %358 = vst [vmem:[%s691_s4 + $0x18] sm:$0xff] %v342_v9  ;;  %366 = vst [vmem:[%s691_s4 + $0x58] sm:$0xff] %v350_v10  ;;  %v261_v15 = vadd.f32 %v573_v26, %v260_v11  ;;  %v293_v16 = vadd.f32 %v573_v26, %v292_v13  ;;  %v262_v17 = vpop.f32.mrb[9].mxu0  ;;  %v294_v18 = vpop.f32.mrb[9].mxu1 }
 0x10a   :  { %v263_v19 = vpop.f32.mrb[10].mxu0  ;;  %v295_v21 = vpop.f32.mrb[10].mxu1 }
 0x10b   :  { %v327_v23 = vadd.f32 %v311_v12, %v261_v15  ;;  %v335_v24 = vadd.f32 %v319_v14, %v293_v16  ;;  %v264_v25 = vadd.f32 %v573_v26, %v263_v19  ;;  %v296_v27 = vadd.f32 %v573_v26, %v295_v21  ;;  %v265_v28 = vpop.f32.mrb[11].mxu0  ;;  %v297_v29 = vpop.f32.mrb[11].mxu1 }
 0x10d   :  { %v343_v30 = vmax.f32 %v327_v23, 0.0  ;;  %v351_v31 = vmax.f32 %v335_v24, 0.0  ;;  %v328_v32 = vadd.f32 %v312_v20, %v264_v25  ;;  %v336_v33 = vadd.f32 %v320_v22, %v296_v27 }
 0x10f   :  { %359 = vst [vmem:[%s691_s4 + $0x20] sm:$0xff] %v343_v30  ;;  %367 = vst [vmem:[%s691_s4 + $0x60] sm:$0xff] %v351_v31  ;;  %v344_v34 = vmax.f32 %v328_v32, 0.0  ;;  %v352_v35 = vmax.f32 %v336_v33, 0.0 }
 0x110   :  { %v268_v36 = vpop.f32.mrb[12].mxu0  ;;  %v300_v38 = vpop.f32.mrb[12].mxu1 }
 0x111   :  { %360 = vst [vmem:[%s691_s4 + $0x28] sm:$0xff] %v344_v34  ;;  %368 = vst [vmem:[%s691_s4 + $0x68] sm:$0xff] %v352_v35  ;;  %v269_v40 = vadd.f32 %v573_v26, %v268_v36  ;;  %v301_v41 = vadd.f32 %v573_v26, %v300_v38  ;;  %v270_v42 = vpop.f32.mrb[13].mxu0  ;;  %v302_v43 = vpop.f32.mrb[13].mxu1 }
 0x112   :  { %v271_v44 = vpop.f32.mrb[14].mxu0  ;;  %v303_v46 = vpop.f32.mrb[14].mxu1 }
 0x113   :  { %v329_v48 = vadd.f32 %v313_v37, %v269_v40  ;;  %v337_v49 = vadd.f32 %v321_v39, %v301_v41  ;;  %v272_v50 = vadd.f32 %v573_v26, %v271_v44  ;;  %v304_v51 = vadd.f32 %v573_v26, %v303_v46  ;;  %v273_v52 = vpop.f32.mrb[15].mxu0  ;;  %v305_v53 = vpop.f32.mrb[15].mxu1 }
 0x115   :  { %v345_v54 = vmax.f32 %v329_v48, 0.0  ;;  %v353_v55 = vmax.f32 %v337_v49, 0.0  ;;  %v330_v56 = vadd.f32 %v314_v45, %v272_v50  ;;  %v338_v57 = vadd.f32 %v322_v47, %v304_v51 }
 0x117   :  { %361 = vst [vmem:[%s691_s4 + $0x30] sm:$0xff] %v345_v54  ;;  %369 = vst [vmem:[%s691_s4 + $0x70] sm:$0xff] %v353_v55  ;;  %v346_v58 = vmax.f32 %v330_v56, 0.0  ;;  %v354_v59 = vmax.f32 %v338_v57, 0.0 }
 0x119   :  { %362 = vst [vmem:[%s691_s4 + $0x38] sm:$0xff] %v346_v58  ;;  %370 = vst [vmem:[%s691_s4 + $0x78] sm:$0xff] %v354_v59 }

// kernel: visual_model_forward.13
= control target key start
LH: loop header
LB: loop body
LE: loop exit
PB: predicated region body
PF: predicated region fallthrough
CT: control target
= control target key end

     0   :  { %v241_v0 = vmov 0   ;;  %vm116_vm0 = vcmask 130048   ;;  %v172_v14 = vlaneseq  ;;  %s320_s1 = inlined_call_operand.vmem [shape: bf16[144,128], index: 1, kind: input, shape index: {}]   ;;  %s321_s0 = inlined_call_operand.vmem [shape: bf16[32,144], index: 0, kind: input, shape index: {}]   ;;  %s322_s2 = inlined_call_operand.vmem [shape: f32[1,128], index: 2, kind: input, shape index: {}]   ;;  %s323_s3 = inlined_call_operand.vmem [shape: f32[32,128], index: 3, kind: output, shape index: {}]  }
   0x1   :  { %123 = vmatprep.subr.bf16.mxu0 %v241_v0  ;;  %207 = vmatprep.subr.bf16.mxu1 %v241_v0  ;;  %v226_v1 = vld [vmem:[%s320_s1] sm:$0xff]   ;;  %v227_v2 = vld [vmem:[%s320_s1 + $0x8] sm:$0xff]   ;;  %v228_v3 = vld [vmem:[%s320_s1 + $0x10] sm:$0xff]  }
   0x2   :  { %124 = vmatpush1.bf16.msra.mxu0 %v226_v1  ;;  %216 = vmatpush1.bf16.msra.mxu1 %v226_v1  ;;  %v229_v4 = vld [vmem:[%s320_s1 + $0x18] sm:$0xff]   ;;  %v237_v5 = vld [vmem:[%s321_s0 + $0x4] ss:$8 sps:$4 sm:$0xff]   ;;  %v232_v9 = vld [vmem:[%s320_s1 + $0x30] sm:$0xff]   ;;  %v173_v16 = vand.u32 127, %v172_v14 }
   0x3   :  { %125 = vmatprep.subr.bf16.mxu0 %v241_v0  ;;  %208 = vmatprep.subr.bf16.mxu1 %v241_v0  ;;  %v240_v6 = vld [vmem:[%s321_s0 + $0x14] ss:$8 sps:$4 sm:$0xff]   ;;  %v230_v7 = vld [vmem:[%s320_s1 + $0x20] sm:$0xff]   ;;  %v231_v8 = vld [vmem:[%s320_s1 + $0x28] sm:$0xff]  }
   0x4   :  { %205 = vmatprep.mubr.msk.bf16.mxu0 %vm116_vm0, %v237_v5  ;;  %206 = vmatprep.mubr.msk.bf16.mxu1 %vm116_vm0, %v240_v6  ;;  %v233_v10 = vld [vmem:[%s320_s1 + $0x38] sm:$0xff]   ;;  %v234_v11 = vld [vmem:[%s320_s1 + $0x40] sm:$0xff]   ;;  %vm174_vm1 = vcmp.lt.s32.totalorder %v173_v16, 32 }
   0x5   :  { %v235_v12 = vld [vmem:[%s321_s0] ss:$8 sps:$4 sm:$0xff]   ;;  %v238_v13 = vld [vmem:[%s321_s0 + $0x10] ss:$8 sps:$4 sm:$0xff]  }
   0x6   :  { %126 = vmatpush1.bf16.msra.mxu0 %v227_v2  ;;  %217 = vmatpush1.bf16.msra.mxu1 %v227_v2  ;;  %v191_v15 = vld [vmem:[%s322_s2] ss:$0 sm:$0xff] }
   0x7   :  { %127 = vmatprep.subr.bf16.mxu0 %v241_v0  ;;  %209 = vmatprep.subr.bf16.mxu1 %v241_v0 }
   0xa   :  { %128 = vmatpush1.bf16.msra.mxu0 %v228_v3  ;;  %218 = vmatpush1.bf16.msra.mxu1 %v228_v3 }
   0xb   :  { %129 = vmatprep.subr.bf16.mxu0 %v241_v0  ;;  %210 = vmatprep.subr.bf16.mxu1 %v241_v0 }
   0xe   :  { %130 = vmatpush1.bf16.msra.mxu0 %v229_v4  ;;  %219 = vmatpush1.bf16.msra.mxu1 %v229_v4 }
   0xf   :  { %131 = vmatprep.subr.bf16.mxu0 %v241_v0  ;;  %211 = vmatprep.subr.bf16.mxu1 %v241_v0 }
  0x12   :  { %132 = vmatpush1.bf16.msra.mxu0 %v230_v7  ;;  %220 = vmatpush1.bf16.msra.mxu1 %v230_v7 }
  0x13   :  { %133 = vmatprep.subr.bf16.mxu0 %v241_v0  ;;  %212 = vmatprep.subr.bf16.mxu1 %v241_v0 }
  0x16   :  { %134 = vmatpush1.bf16.msra.mxu0 %v231_v8  ;;  %221 = vmatpush1.bf16.msra.mxu1 %v231_v8 }
  0x17   :  { %135 = vmatprep.subr.bf16.mxu0 %v241_v0  ;;  %213 = vmatprep.subr.bf16.mxu1 %v241_v0 }
  0x1a   :  { %136 = vmatpush1.bf16.msra.mxu0 %v232_v9  ;;  %222 = vmatpush1.bf16.msra.mxu1 %v232_v9 }
  0x1b   :  { %137 = vmatprep.subr.bf16.mxu0 %v241_v0  ;;  %214 = vmatprep.subr.bf16.mxu1 %v241_v0 }
  0x1e   :  { %138 = vmatpush1.bf16.msra.mxu0 %v233_v10  ;;  %223 = vmatpush1.bf16.msra.mxu1 %v233_v10 }
  0x1f   :  { %139 = vmatprep.subr.bf16.mxu0 %v241_v0  ;;  %215 = vmatprep.subr.bf16.mxu1 %v241_v0 }
  0x22   :  { %140 = vmatpush1.bf16.msra.mxu0 %v234_v11  ;;  %224 = vmatpush1.bf16.msra.mxu1 %v234_v11 }
  0x25   :  { %156 = vmatmul.mubr.bf16.vlgmr.msra.gmra.mrb[0].mxu0 %v235_v12  ;;  %164 = vmatmul.mubr.bf16.vlgmr.msra.gmra.mrb[0].mxu1 %v238_v13 }
  0xf8   :  { %v157_v17 = vpop.f32.mrb[0].mxu0  ;;  %v165_v18 = vpop.f32.mrb[0].mxu1 }
  0xf9   :  { %v158_v19 = vadd.f32 %v191_v15, %v157_v17  ;;  %v166_v20 = vadd.f32 %v191_v15, %v165_v18  ;;  %v159_v21 = vpop.f32.mrb[1].mxu0  ;;  %v167_v22 = vpop.f32.mrb[1].mxu1 }
  0xfa   :  { %v160_v23 = vpop.f32.mrb[2].mxu0  ;;  %v168_v24 = vpop.f32.mrb[2].mxu1 }
  0xfb   :  { %v175_v25 = vmax.f32 %v158_v19, 0.0  ;;  %v177_v26 = vmax.f32 %v166_v20, 0.0  ;;  %v161_v27 = vadd.f32 %v191_v15, %v160_v23  ;;  %v169_v28 = vadd.f32 %v191_v15, %v168_v24  ;;  %v162_v29 = vpop.f32.mrb[3].mxu0  ;;  %v170_v30 = vpop.f32.mrb[3].mxu1 }
  0xfd   :  { %v179_v31 = vsel %vm174_vm1, %v175_v25, %v158_v19  ;;  %v181_v32 = vsel %vm174_vm1, %v177_v26, %v166_v20  ;;  %v176_v33 = vmax.f32 %v161_v27, 0.0  ;;  %v178_v34 = vmax.f32 %v169_v28, 0.0 }
  0xfe   :  { %183 = vst [vmem:[%s323_s3] sm:$0xff] %v179_v31  ;;  %185 = vst [vmem:[%s323_s3 + $0x10] sm:$0xff] %v181_v32 }
  0xff   :  { %v180_v35 = vsel %vm174_vm1, %v176_v33, %v161_v27  ;;  %v182_v36 = vsel %vm174_vm1, %v178_v34, %v169_v28 }
 0x100   :  { %184 = vst [vmem:[%s323_s3 + $0x8] sm:$0xff] %v180_v35  ;;  %186 = vst [vmem:[%s323_s3 + $0x18] sm:$0xff] %v182_v36 }

// kernel: visual_model_forward.14
= control target key start
LH: loop header
LB: loop body
LE: loop exit
PB: predicated region body
PF: predicated region fallthrough
CT: control target
= control target key end

     0   :  { %vm207_vm0 = vcmask 261120   ;;  %s549_s1 = inlined_call_operand.vmem [shape: bf16[288,128], index: 1, kind: input, shape index: {}]   ;;  %s550_s0 = inlined_call_operand.vmem [shape: bf16[32,288], index: 0, kind: input, shape index: {}]   ;;  %s551_s2 = inlined_call_operand.vmem [shape: f32[1,128], index: 2, kind: input, shape index: {}]   ;;  %s552_s3 = inlined_call_operand.vmem [shape: f32[32,128], index: 3, kind: input, shape index: {}]   ;;  %s553_s4 = inlined_call_operand.vmem [shape: f32[32,128], index: 4, kind: output, shape index: {}]  }
   0x1   :  { %v399_v0 = vld [vmem:[%s549_s1 + $0x40] sm:$0xff]   ;;  %v401_v2 = vld [vmem:[%s549_s1 + $0x48] sm:$0xff]   ;;  %v403_v4 = vld [vmem:[%s549_s1 + $0x50] sm:$0xff]  }
   0x2   :  { %v400_v1 = vld [vmem:[%s549_s1] sm:$0xff]   ;;  %359 = vmatprep.subr.bf16.mxu0 %v399_v0  ;;  %v402_v3 = vld [vmem:[%s549_s1 + $0x8] sm:$0xff]   ;;  %v404_v5 = vld [vmem:[%s549_s1 + $0x10] sm:$0xff]  }
   0x3   :  { %360 = vmatpush3.bf16.msra.mxu0 %v400_v1  ;;  %v405_v6 = vld [vmem:[%s549_s1 + $0x58] sm:$0xff]   ;;  %v407_v8 = vld [vmem:[%s549_s1 + $0x60] sm:$0xff]   ;;  %v409_v11 = vld [vmem:[%s549_s1 + $0x68] sm:$0xff]  }
   0x4   :  { %361 = vmatprep.subr.bf16.mxu0 %v401_v2  ;;  %v406_v7 = vld [vmem:[%s549_s1 + $0x18] sm:$0xff]   ;;  %v408_v9 = vld [vmem:[%s549_s1 + $0x20] sm:$0xff]   ;;  %v410_v12 = vld [vmem:[%s549_s1 + $0x28] sm:$0xff]  }
   0x5   :  { %v414_v10 = vld [vmem:[%s549_s1 + $0x80] sm:$0xff]   ;;  %v411_v13 = vld [vmem:[%s549_s1 + $0x70] sm:$0xff]   ;;  %v419_v15 = vld [vmem:[%s549_s1 + $0x88] sm:$0xff]  }
   0x6   :  { %391 = vmatprep.subr.bf16.mxu1 %v414_v10  ;;  %v418_v14 = vld [vmem:[%s550_s0 + $0x4] ss:$12 sps:$4 sm:$0xff]   ;;  %v420_v16 = vld [vmem:[%s550_s0 + $0x8] ss:$12 sps:$4 sm:$0xff]   ;;  %v421_v17 = vld [vmem:[%s550_s0 + $0x20] ss:$12 sps:$4 sm:$0xff]  }
   0x7   :  { %362 = vmatpush3.bf16.msra.mxu0 %v402_v3  ;;  %392 = vmatpush3.bf16.msra.mxu1 %v414_v10  ;;  %v412_v18 = vld [vmem:[%s549_s1 + $0x30] sm:$0xff]   ;;  %v413_v19 = vld [vmem:[%s549_s1 + $0x78] sm:$0xff]   ;;  %v416_v21 = vld [vmem:[%s550_s0] ss:$12 sps:$4 sm:$0xff]  }
   0x8   :  { %363 = vmatprep.subr.bf16.mxu0 %v403_v4  ;;  %246 = vmatprep.mubr.bf16.mxu0 %v418_v14  ;;  %v415_v20 = vld [vmem:[%s549_s1 + $0x38] sm:$0xff]   ;;  %v332_v30 = vld [vmem:[%s551_s2] ss:$0 sm:$0xff]  ;;  %v313_v39 = vld [vmem:[%s552_s3 + $0x8] sm:$0xff] }
   0x9   :  { %393 = vmatprep.subr.bf16.mxu1 %v419_v15  ;;  %395 = vmatprep.mubr.msk.bf16.mxu1 %vm207_vm0, %v420_v16  ;;  %v422_v22 = vld [vmem:[%s550_s0 + $0x1c] ss:$12 sps:$4 sm:$0xff]   ;;  %v424_v23 = vld [vmem:[%s550_s0 + $0x18] ss:$12 sps:$4 sm:$0xff]   ;;  %v314_v52 = vld [vmem:[%s552_s3 + $0x10] sm:$0xff] }
   0xa   :  { %v312_v36 = vld [vmem:[%s552_s3] sm:$0xff]  ;;  %v315_v55 = vld [vmem:[%s552_s3 + $0x18] sm:$0xff] }
   0xb   :  { %364 = vmatpush3.bf16.msra.mxu0 %v404_v5  ;;  %394 = vmatpush3.bf16.msra.mxu1 %v419_v15 }
   0xc   :  { %365 = vmatprep.subr.bf16.mxu0 %v405_v6 }
   0xe   :  { %396 = vmatmul.mubr.msk.bf16.vlgmr.msra.gmra.mrb[0].mxu1 %vm207_vm0, %v421_v17 }
   0xf   :  { %366 = vmatpush3.bf16.msra.mxu0 %v406_v7 }
  0x10   :  { %367 = vmatprep.subr.bf16.mxu0 %v407_v8 }
  0x13   :  { %368 = vmatpush3.bf16.msra.mxu0 %v408_v9 }
  0x14   :  { %369 = vmatprep.subr.bf16.mxu0 %v409_v11 }
  0x17   :  { %370 = vmatpush3.bf16.msra.mxu0 %v410_v12 }
  0x18   :  { %371 = vmatprep.subr.bf16.mxu0 %v411_v13 }
  0x1b   :  { %372 = vmatpush3.bf16.msra.mxu0 %v412_v18 }
  0x1c   :  { %373 = vmatprep.subr.bf16.mxu0 %v413_v19 }
  0x1f   :  { %374 = vmatpush3.bf16.msra.mxu0 %v415_v20 }
  0x22   :  { %247 = vmatmul.mubr.bf16.vlgmr.msra.gmra.mrb[0].mxu0 %v416_v21 }
  0x23   :  { %254 = vmatprep.mubr.bf16.mxu0 %v422_v22 }
  0x2a   :  { %255 = vmatmul.mubr.bf16.gmra.mrb[4].mxu0 %v424_v23 }
  0xe1   :  { %v397_v24 = vpop.f32.mrb[0].mxu1 }
  0xe2   :  { %v297_v25 = vpop.f32.mrb[1].mxu1 }
  0xe3   :  { %v398_v26 = vpop.f32.mrb[2].mxu1 }
  0xe4   :  { %v300_v27 = vpop.f32.mrb[3].mxu1 }
  0xf5   :  { %v375_v28 = vpop.f32.mrb[0].mxu0 }
  0xf6   :  { %v376_v29 = vpop.f32.mrb[1].mxu0 }
  0xf7   :  { %v377_v31 = vadd.f32 %v376_v29, %v375_v28  ;;  %v378_v32 = vpop.f32.mrb[2].mxu0 }
  0xf8   :  { %v379_v33 = vpop.f32.mrb[3].mxu0 }
  0xf9   :  { %v380_v34 = vadd.f32 %v379_v33, %v378_v32  ;;  %v249_v35 = vadd.f32 %v377_v31, %v332_v30 }
  0xfb   :  { %v298_v37 = vadd.f32 %v297_v25, %v249_v35  ;;  %v252_v38 = vadd.f32 %v380_v34, %v332_v30 }
  0xfd   :  { %v316_v40 = vadd.f32 %v312_v36, %v298_v37  ;;  %v301_v41 = vadd.f32 %v300_v27, %v252_v38  ;;  %v381_v42 = vpop.f32.mrb[4].mxu0 }
  0xfe   :  { %v382_v43 = vpop.f32.mrb[5].mxu0 }
  0xff   :  { %v320_v44 = vmax.f32 %v316_v40, 0.0  ;;  %v317_v45 = vadd.f32 %v313_v39, %v301_v41  ;;  %v383_v46 = vadd.f32 %v382_v43, %v381_v42  ;;  %v384_v47 = vpop.f32.mrb[6].mxu0 }
 0x100   :  { %v385_v48 = vpop.f32.mrb[7].mxu0 }
 0x101   :  { %324 = vst [vmem:[%s553_s4] sm:$0xff] %v320_v44  ;;  %v321_v49 = vmax.f32 %v317_v45, 0.0  ;;  %v257_v50 = vadd.f32 %v383_v46, %v332_v30  ;;  %v386_v51 = vadd.f32 %v385_v48, %v384_v47 }
 0x103   :  { %325 = vst [vmem:[%s553_s4 + $0x8] sm:$0xff] %v321_v49  ;;  %v306_v53 = vadd.f32 %v397_v24, %v257_v50  ;;  %v260_v54 = vadd.f32 %v386_v51, %v332_v30 }
 0x105   :  { %v318_v56 = vadd.f32 %v314_v52, %v306_v53  ;;  %v309_v57 = vadd.f32 %v398_v26, %v260_v54 }
 0x107   :  { %v322_v58 = vmax.f32 %v318_v56, 0.0  ;;  %v319_v59 = vadd.f32 %v315_v55, %v309_v57 }
 0x109   :  { %326 = vst [vmem:[%s553_s4 + $0x10] sm:$0xff] %v322_v58  ;;  %v323_v60 = vmax.f32 %v319_v59, 0.0 }
 0x10b   :  { %327 = vst [vmem:[%s553_s4 + $0x18] sm:$0xff] %v323_v60 }

// kernel: visual_model_forward.15
= control target key start
LH: loop header
LB: loop body
LE: loop exit
PB: predicated region body
PF: predicated region fallthrough
CT: control target
= control target key end

     0   :  { %s109_s0 = inlined_call_operand.vmem [shape: f32[2,16,128], index: 0, kind: input, shape index: {}]   ;;  %s110_s1 = inlined_call_operand.hbm [shape: f32[2,128], index: 1, kind: output, shape index: {}]  }
   0x1   :  { %v9_v0 = vld [vmem:[%s109_s0] sm:$0xff]  ;;  %v10_v1 = vld [vmem:[%s109_s0 + $0x8] sm:$0xff]  ;;  %v11_v2 = vld [vmem:[%s109_s0 + $0x10] sm:$0xff] }
   0x2   :  { %v12_v3 = vld [vmem:[%s109_s0 + $0x18] sm:$0xff]  ;;  %v13_v4 = vadd.f32 %v10_v1, %v9_v0 }
   0x3   :  { %6 = vsyncpa [#allocation3], 0  ;;  %v20_v5 = vadd.f32 %v12_v3, %v11_v2  ;;  %s74_s14 = smov [#allocation2]   ;;  %vm31_vm0 = vcmask 1041409  }
   0x4   :  { %v14_v6 = vrot.slane %v13_v4, 4  ;;  %s41_s15 = sshll.u32 %s74_s14, 4  ;;  %s42_s15 = int_to_ptr.vmem [resolvable:$true] %s41_s15 }
   0x5   :  { %v21_v7 = vrot.slane %v20_v5, 4  ;;  %s50_s0 = scalar_lea.vmem %s42_s15, 32  ;;  %p55_p1 = scmp.lt.s32.totalorder %s42_s15, %s42_s15 }
   0x6   :  { %v15_v8 = vadd.f32 %v14_v6, %v13_v4  ;;  %p51_p0 = scmp.ne.s32.totalorder %s42_s15, %s50_s0  ;;  %p56_p2 = scmp.lt.s32.totalorder %s50_s0, %s50_s0 }
   0x7   :  { %v22_v9 = vadd.f32 %v21_v7, %v20_v5 }
   0x8   :  { %v16_v10 = vrot.slane %v15_v8, 2  ;;  %p57_p3 = por %p56_p2, %p55_p1 }
   0x9   :  { %v23_v11 = vrot.slane %v22_v9, 2 }
   0xa   :  { %v17_v12 = vadd.f32 %v16_v10, %v15_v8  ;;  %p58_p4 = pnand %p57_p3, %p51_p0 }
   0xb   :  { %v24_v13 = vadd.f32 %v23_v11, %v22_v9 }
   0xc   :  { %v18_v14 = vrot.slane %v17_v12, 1 }
   0xd   :  { %v25_v15 = vrot.slane %v24_v13, 1 }
   0xe   :  { %v19_v16 = vadd.f32 %v18_v14, %v17_v12 }
   0xf   :  { %v26_v17 = vadd.f32 %v25_v15, %v24_v13 }
  0x10   :  { %v27_v18 = vmul.f32 0.0625, %v19_v16 }
  0x11   :  { %v28_v19 = vmul.f32 0.0625, %v26_v17 }
  0x13   :  { %v32_v20 = vsel %vm31_vm0, %v28_v19, %v27_v18 }
  0x14   :  { %34 = vst [vmem:[#allocation2] sm:$0x3] %v32_v20 }
  0x15   :  { %61 = shalt.err (!%p58_p4)
}
  0x16   :  { %s62_s18 = scalar_lea.hbm %s110_s1, 32 }
  0x17   :  { %p63_p5 = scmp.ne.s32.totalorder %s110_s1, %s62_s18  ;;  %p66_p6 = scmp.lt.u32.totalorder %s62_s18, %s110_s1 }
  0x19   :  { %p68_p7 = pnand %p66_p6, %p63_p5 }
  0x1b   :  { %71 = shalt.err (!%p68_p7)
}
  0x1c   :  { %44 = dma.vmem_to_hbm [thread:$0]  %s42_s15, 32, %s110_s1, [#allocation3]  }
  0x1d   :  { %72 = dma.done.wait [#allocation3], 32  }
  0x1e   :  { %73 = vsyncadd [#allocation3], 4294967264 }
  0x1f   :  { %48 = vsyncpa [#allocation3], 1 }

</bundles_post_ra>
